<compile_context>
chip_gen: v5e
topology: v5e:2x2
jax: 0.10.0
libtpu: 0.0.40
codegen_flags: <defaults>
</compile_context>

<pallas_src>
import functools

import jax
import jax.numpy as jnp
from jax import lax
from jax.experimental import pallas as pl
from jax.experimental.pallas import tpu as pltpu

# ----------------------------- model dims (small) -----------------------------
B = 2          # batch
S = 16         # sequence length
H = 128        # hidden size
NH = 4         # attention heads
D = H // NH    # head dim = 32
FFN = 256      # gated-MLP intermediate size
RMS_EPS = 1e-6


# --------------------------- fused transformer block ---------------------------
def _rmsnorm_to_bf16(x_f32, w_row_f32):
    # RMSNorm in f32 (safe on v5e: no bf16 VPU/EUP), emit bf16 for the MXU.
    var = jnp.mean(x_f32 * x_f32, axis=-1, keepdims=True)
    y = x_f32 * lax.rsqrt(var + RMS_EPS)
    return (y * w_row_f32).astype(jnp.bfloat16)


def _block_kernel(x_ref, norms_ref, wbig_ref, wd_ref, o_ref, *,
                  batch, s_len, num_heads, scale):
    hdim = o_ref.shape[-1]
    hd = hdim // num_heads
    ffn = wd_ref.shape[0]

    # Residual stream for the whole batch, upcast to f32 inside the kernel.
    x = x_ref[...].astype(jnp.float32)                       # (B*S, H) f32

    norms = norms_ref[...]                                   # (2, H) f32
    attn_w = norms[0:1, :]
    mlp_w = norms[1:2, :]

    # Packed H-leading weight slab: [ Wqkv (3H) | Wo (H) | Wg|Wu (2*FFN) ].
    # All slices are at 128-lane multiples -> vreg-aligned, free.
    wbig = wbig_ref[...]                                     # (H, 1024) bf16
    wqkv = wbig[:, :3 * hdim]                                # (H, 3H)
    wo = wbig[:, 3 * hdim:4 * hdim]                          # (H, H)
    wgu = wbig[:, 4 * hdim:]                                 # (H, 2*FFN)

    # ---------------- attention branch ----------------
    y = _rmsnorm_to_bf16(x, attn_w)                          # (B*S, H) bf16
    # fused QKV projection, bf16 x bf16 -> f32 accumulate, M=32 N=384 K=128
    qkv = jnp.dot(y, wqkv, preferred_element_type=jnp.float32).astype(jnp.bfloat16)

    # additive causal mask built once (every row has the diagonal unmasked)
    row = lax.broadcasted_iota(jnp.int32, (s_len, s_len), 0)
    col = lax.broadcasted_iota(jnp.int32, (s_len, s_len), 1)
    addmask = jnp.where(col <= row, 0.0, -1e30).astype(jnp.float32)

    # per-(batch, head) SDPA with statically-unrolled loops; ctx tiles are
    # assembled so the o-proj runs ONCE at full contraction depth K=H=128.
    ctx_rows = []
    for b in range(batch):
        r0 = b * s_len
        qb = qkv[r0:r0 + s_len, 0 * hdim:1 * hdim]           # (S, H) bf16
        kb = qkv[r0:r0 + s_len, 1 * hdim:2 * hdim]
        vb = qkv[r0:r0 + s_len, 2 * hdim:3 * hdim]
        head_ctx = []
        for h in range(num_heads):
            c0 = h * hd
            qh = qb[:, c0:c0 + hd]                           # (S, D) bf16
            kh = kb[:, c0:c0 + hd]
            vh = vb[:, c0:c0 + hd]
            scores = lax.dot_general(
                qh, kh, (((1,), (1,)), ((), ())),
                preferred_element_type=jnp.float32) * scale + addmask
            m = jnp.max(scores, axis=-1, keepdims=True)
            p = jnp.exp(scores - m)
            l = jnp.sum(p, axis=-1, keepdims=True)
            p = (p * pl.reciprocal(l, approx=True)).astype(jnp.bfloat16)
            head_ctx.append(jnp.dot(p, vh, preferred_element_type=jnp.float32))
        ctx_rows.append(jnp.concatenate(head_ctx, axis=-1))  # (S, H) f32
    ctx = jnp.concatenate(ctx_rows, axis=0).astype(jnp.bfloat16)   # (B*S, H) bf16

    # single full-depth o-proj (M=32, N=128, K=128) + residual add in f32
    x = x + jnp.dot(ctx, wo, preferred_element_type=jnp.float32)

    # ---------------- MLP branch ----------------
    y = _rmsnorm_to_bf16(x, mlp_w)                           # (B*S, H) bf16
    # fused gate|up projection: one 512-wide MXU matmul
    gu = jnp.dot(y, wgu, preferred_element_type=jnp.float32)  # (B*S, 2*FFN) f32
    g = gu[:, :ffn]
    u = gu[:, ffn:]
    hact = (g * jax.nn.sigmoid(g) * u).astype(jnp.bfloat16)   # silu(g)*u, f32 math

    x = x + jnp.dot(hact, wd_ref[...], preferred_element_type=jnp.float32)

    o_ref[...] = x                                            # (B*S, H) f32 residual


# --------------------------- TransformerBlock.forward --------------------------
def transformer_block_forward(x, params, prefill=False, out_dtype=None):
    # `params.get('prefill')` in the reference returns x unchanged; hoisted above
    # all compute so nothing is wasted.
    if prefill:
        return x

    b, s, h = x.shape
    n = b * s
    x2 = x.reshape(n, h)   # contiguous reshape: metadata-only, no HBM round trip

    # advisory cost estimate for XLA's scheduler
    flops = (2 * n * h * (3 * h)            # qkv proj
             + 2 * b * NH * 2 * s * s * D   # scores + p@v
             + 2 * n * h * h                # o proj
             + 2 * n * h * (2 * FFN)        # gate|up proj
             + 2 * n * FFN * h)             # down proj
    transcendentals = b * NH * s * s + n * FFN + 2 * n + b * NH * s
    bytes_accessed = (x2.size * 4 + params["norms"].size * 4
                      + params["wbig"].size * 2 + params["wd"].size * 2
                      + n * h * 4)

    out = pl.pallas_call(
        functools.partial(_block_kernel, batch=b, s_len=s,
                          num_heads=NH, scale=1.0 / (D ** 0.5)),
        out_shape=jax.ShapeDtypeStruct((n, h), jnp.float32),
        # single grid step: whole arrays resident in VMEM, no pipelining machinery
        in_specs=[
            pl.BlockSpec(memory_space=pltpu.MemorySpace.VMEM),   # x (B*S, H)
            pl.BlockSpec(memory_space=pltpu.MemorySpace.VMEM),   # norms (2, H)
            pl.BlockSpec(memory_space=pltpu.MemorySpace.VMEM),   # Wqkv|Wo|Wgu slab
            pl.BlockSpec(memory_space=pltpu.MemorySpace.VMEM),   # Wd
        ],
        out_specs=pl.BlockSpec(memory_space=pltpu.MemorySpace.VMEM),
        cost_estimate=pl.CostEstimate(flops=int(flops),
                                      transcendentals=int(transcendentals),
                                      bytes_accessed=int(bytes_accessed)),
    )(x2, params["norms"], params["wbig"], params["wd"])

    out = out.reshape(b, s, h)
    # to2(x, out_dtype, self.out_dtype): out_dtype=None keeps residual dtype (f32)
    if out_dtype is not None:
        out = out.astype(out_dtype)
    return out


# --------------------------- pure-JAX reference (check) ------------------------
def reference_forward(x, params):
    wbig = params["wbig"].astype(jnp.float32)
    wqkv = wbig[:, :3 * H]
    wo = wbig[:, 3 * H:4 * H]
    wg = wbig[:, 4 * H:4 * H + FFN]
    wu = wbig[:, 4 * H + FFN:]
    wd = params["wd"].astype(jnp.float32)
    anw = params["norms"][0]
    mnw = params["norms"][1]

    def rms(v, w):
        var = jnp.mean(v * v, axis=-1, keepdims=True)
        return v * lax.rsqrt(var + RMS_EPS) * w

    xf = x.astype(jnp.float32)
    y = rms(xf, anw)
    qkv = y @ wqkv
    q = qkv[..., :H].reshape(B, S, NH, D)
    k = qkv[..., H:2 * H].reshape(B, S, NH, D)
    v = qkv[..., 2 * H:].reshape(B, S, NH, D)
    scores = jnp.einsum('bqhd,bkhd->bhqk', q, k) / jnp.sqrt(D)
    mask = jnp.tril(jnp.ones((S, S), bool))
    scores = jnp.where(mask, scores, -jnp.inf)
    p = jax.nn.softmax(scores, axis=-1)
    ctx = jnp.einsum('bhqk,bkhd->bqhd', p, v).reshape(B, S, H)
    xf = xf + ctx @ wo
    y = rms(xf, mnw)
    g = y @ wg
    u = y @ wu
    xf = xf + (jax.nn.silu(g) * u) @ wd
    return xf


# ----------------------------------- main --------------------------------------
def make_params(key):
    ks = jax.random.split(key, 6)
    scale = 0.02
    wqkv = (jax.random.normal(ks[0], (H, 3 * H), jnp.float32) * scale).astype(jnp.bfloat16)
    wo = (jax.random.normal(ks[1], (H, H), jnp.float32) * scale).astype(jnp.bfloat16)
    wg = (jax.random.normal(ks[2], (H, FFN), jnp.float32) * scale).astype(jnp.bfloat16)
    wu = (jax.random.normal(ks[3], (H, FFN), jnp.float32) * scale).astype(jnp.bfloat16)
    wd = (jax.random.normal(ks[4], (FFN, H), jnp.float32) * scale).astype(jnp.bfloat16)
    params = {
        # both RMSNorm weights packed into one (2, H) f32 array (one tiny DMA)
        "norms": jnp.ones((2, H), jnp.float32),
        # all H-leading weights packed into one (H, 1024) bf16 slab (one DMA)
        "wbig": jnp.concatenate([wqkv, wo, wg, wu], axis=1),
        "wd": wd,
    }
    return params, ks[5]


if __name__ == "__main__":
    key = jax.random.PRNGKey(0)
    params, xkey = make_params(key)
    x = jax.random.normal(xkey, (B, S, H), jnp.float32)

    out = transformer_block_forward(x, params, prefill=False)
    out = jax.block_until_ready(out)
    assert out.shape == (B, S, H) and out.dtype == jnp.float32
    assert bool(jnp.all(jnp.isfinite(out)))

    # tolerance-based check vs. a pure-JAX reference (bf16 weights, approx recip)
    ref = reference_forward(x, params)
    assert bool(jnp.allclose(out, ref, atol=5e-2, rtol=5e-2))

    # prefill path: returns the input residual unchanged (hoisted, no compute)
    pre = transformer_block_forward(x, params, prefill=True)
    assert pre.shape == x.shape

    print("KERNEL_OK")
</pallas_src>

<mosaic_0001>
module attributes {stable_mosaic.version = 11 : i64} {
  func.func @_block_kernel(%arg0: memref<32x128xf32, #tpu.memory_space<vmem>>, %arg1: memref<2x128xf32, #tpu.memory_space<vmem>>, %arg2: memref<128x1024xbf16, #tpu.memory_space<vmem>>, %arg3: memref<256x128xbf16, #tpu.memory_space<vmem>>, %arg4: memref<32x128xf32, #tpu.memory_space<vmem>>) attributes {dimension_semantics = [], scalar_prefetch = 0 : i64, scratch_operands = 0 : i64, tpu.core_type = #tpu.core_type<tc>} {
    %c0 = arith.constant 0 : index
    %c0_0 = arith.constant 0 : index
    %0 = vector.load %arg0[%c0, %c0_0] : memref<32x128xf32, #tpu.memory_space<vmem>>, vector<32x128xf32>
    %c0_1 = arith.constant 0 : index
    %c0_2 = arith.constant 0 : index
    %1 = vector.load %arg1[%c0_1, %c0_2] : memref<2x128xf32, #tpu.memory_space<vmem>>, vector<2x128xf32>
    %2 = vector.extract_strided_slice %1 {offsets = [0, 0], sizes = [1, 128], strides = [1, 1]} : vector<2x128xf32> to vector<1x128xf32>
    %3 = vector.extract_strided_slice %1 {offsets = [1, 0], sizes = [1, 128], strides = [1, 1]} : vector<2x128xf32> to vector<1x128xf32>
    %c0_3 = arith.constant 0 : index
    %c0_4 = arith.constant 0 : index
    %4 = vector.load %arg2[%c0_3, %c0_4] : memref<128x1024xbf16, #tpu.memory_space<vmem>>, vector<128x1024xbf16>
    %5 = vector.extract_strided_slice %4 {offsets = [0, 0], sizes = [128, 384], strides = [1, 1]} : vector<128x1024xbf16> to vector<128x384xbf16>
    %6 = vector.extract_strided_slice %4 {offsets = [0, 384], sizes = [128, 128], strides = [1, 1]} : vector<128x1024xbf16> to vector<128x128xbf16>
    %7 = vector.extract_strided_slice %4 {offsets = [0, 512], sizes = [128, 512], strides = [1, 1]} : vector<128x1024xbf16> to vector<128x512xbf16>
    %8 = arith.mulf %0, %0 : vector<32x128xf32>
    %cst = arith.constant dense<0.000000e+00> : vector<32xf32>
    %9 = vector.multi_reduction <add>, %8, %cst [1] : vector<32x128xf32> to vector<32xf32>
    %10 = vector.shape_cast %9 : vector<32xf32> to vector<32x1xf32>
    %cst_5 = arith.constant 1.280000e+02 : f32
    %11 = vector.broadcast %cst_5 : f32 to vector<32x1xf32>
    %12 = arith.divf %10, %11 : vector<32x1xf32>
    %cst_6 = arith.constant 9.99999997E-7 : f32
    %13 = vector.broadcast %cst_6 : f32 to vector<32x1xf32>
    %14 = arith.addf %12, %13 : vector<32x1xf32>
    %15 = math.rsqrt %14 : vector<32x1xf32>
    %16 = vector.broadcast %15 : vector<32x1xf32> to vector<32x128xf32>
    %17 = arith.mulf %0, %16 : vector<32x128xf32>
    %18 = vector.broadcast %2 : vector<1x128xf32> to vector<32x128xf32>
    %19 = arith.mulf %17, %18 : vector<32x128xf32>
    %20 = arith.truncf %19 : vector<32x128xf32> to vector<32x128xbf16>
    %cst_7 = arith.constant dense<0.000000e+00> : vector<32x384xf32>
    %21 = tpu.matmul %20, %5, %cst_7 {dimension_numbers = #tpu.dot_dimension_numbers<[1], [0], [0], [1], [0, 0, 1, 1], [], []>} : vector<32x128xbf16>, vector<128x384xbf16>, vector<32x384xf32> -> vector<32x384xf32>
    %22 = arith.truncf %21 : vector<32x384xf32> to vector<32x384xbf16>
    %23 = tpu.iota {dimensions = array<i32: 0>} : vector<16x16xi32>
    %24 = tpu.iota {dimensions = array<i32: 1>} : vector<16x16xi32>
    %25 = arith.cmpi sle, %24, %23 : vector<16x16xi32>
    %cst_8 = arith.constant 0.000000e+00 : f32
    %cst_9 = arith.constant -1.000000e+30 : f32
    %26 = vector.broadcast %cst_8 : f32 to vector<16x16xf32>
    %27 = vector.broadcast %cst_9 : f32 to vector<16x16xf32>
    %28 = arith.select %25, %26, %27 : vector<16x16xi1>, vector<16x16xf32>
    %29 = vector.extract_strided_slice %22 {offsets = [0, 0], sizes = [16, 128], strides = [1, 1]} : vector<32x384xbf16> to vector<16x128xbf16>
    %30 = vector.extract_strided_slice %22 {offsets = [0, 128], sizes = [16, 128], strides = [1, 1]} : vector<32x384xbf16> to vector<16x128xbf16>
    %31 = vector.extract_strided_slice %22 {offsets = [0, 256], sizes = [16, 128], strides = [1, 1]} : vector<32x384xbf16> to vector<16x128xbf16>
    %32 = vector.extract_strided_slice %29 {offsets = [0, 0], sizes = [16, 32], strides = [1, 1]} : vector<16x128xbf16> to vector<16x32xbf16>
    %33 = vector.extract_strided_slice %30 {offsets = [0, 0], sizes = [16, 32], strides = [1, 1]} : vector<16x128xbf16> to vector<16x32xbf16>
    %34 = vector.extract_strided_slice %31 {offsets = [0, 0], sizes = [16, 32], strides = [1, 1]} : vector<16x128xbf16> to vector<16x32xbf16>
    %cst_10 = arith.constant dense<0.000000e+00> : vector<16x16xf32>
    %35 = tpu.matmul %32, %33, %cst_10 {dimension_numbers = #tpu.dot_dimension_numbers<[1], [1], [0], [0], [0, 0, 1, 0], [], []>} : vector<16x32xbf16>, vector<16x32xbf16>, vector<16x16xf32> -> vector<16x16xf32>
    %cst_11 = arith.constant 0.176776692 : f32
    %36 = vector.broadcast %cst_11 : f32 to vector<16x16xf32>
    %37 = arith.mulf %35, %36 : vector<16x16xf32>
    %38 = arith.addf %37, %28 : vector<16x16xf32>
    %cst_12 = arith.constant dense<0xFF800000> : vector<16xf32>
    %39 = vector.multi_reduction <maximumf>, %38, %cst_12 [1] : vector<16x16xf32> to vector<16xf32>
    %40 = vector.shape_cast %39 : vector<16xf32> to vector<16x1xf32>
    %41 = vector.broadcast %40 : vector<16x1xf32> to vector<16x16xf32>
    %42 = arith.subf %38, %41 : vector<16x16xf32>
    %43 = math.exp %42 : vector<16x16xf32>
    %cst_13 = arith.constant dense<0.000000e+00> : vector<16xf32>
    %44 = vector.multi_reduction <add>, %43, %cst_13 [1] : vector<16x16xf32> to vector<16xf32>
    %45 = vector.shape_cast %44 : vector<16xf32> to vector<16x1xf32>
    %46 = tpu.reciprocal %45 {approx = true} : vector<16x1xf32> -> vector<16x1xf32>
    %47 = vector.broadcast %46 : vector<16x1xf32> to vector<16x16xf32>
    %48 = arith.mulf %43, %47 : vector<16x16xf32>
    %49 = arith.truncf %48 : vector<16x16xf32> to vector<16x16xbf16>
    %cst_14 = arith.constant dense<0.000000e+00> : vector<16x32xf32>
    %50 = tpu.matmul %49, %34, %cst_14 {dimension_numbers = #tpu.dot_dimension_numbers<[1], [0], [0], [1], [0, 0, 1, 1], [], []>} : vector<16x16xbf16>, vector<16x32xbf16>, vector<16x32xf32> -> vector<16x32xf32>
    %51 = vector.extract_strided_slice %29 {offsets = [0, 32], sizes = [16, 32], strides = [1, 1]} : vector<16x128xbf16> to vector<16x32xbf16>
    %52 = vector.extract_strided_slice %30 {offsets = [0, 32], sizes = [16, 32], strides = [1, 1]} : vector<16x128xbf16> to vector<16x32xbf16>
    %53 = vector.extract_strided_slice %31 {offsets = [0, 32], sizes = [16, 32], strides = [1, 1]} : vector<16x128xbf16> to vector<16x32xbf16>
    %cst_15 = arith.constant dense<0.000000e+00> : vector<16x16xf32>
    %54 = tpu.matmul %51, %52, %cst_15 {dimension_numbers = #tpu.dot_dimension_numbers<[1], [1], [0], [0], [0, 0, 1, 0], [], []>} : vector<16x32xbf16>, vector<16x32xbf16>, vector<16x16xf32> -> vector<16x16xf32>
    %cst_16 = arith.constant 0.176776692 : f32
    %55 = vector.broadcast %cst_16 : f32 to vector<16x16xf32>
    %56 = arith.mulf %54, %55 : vector<16x16xf32>
    %57 = arith.addf %56, %28 : vector<16x16xf32>
    %cst_17 = arith.constant dense<0xFF800000> : vector<16xf32>
    %58 = vector.multi_reduction <maximumf>, %57, %cst_17 [1] : vector<16x16xf32> to vector<16xf32>
    %59 = vector.shape_cast %58 : vector<16xf32> to vector<16x1xf32>
    %60 = vector.broadcast %59 : vector<16x1xf32> to vector<16x16xf32>
    %61 = arith.subf %57, %60 : vector<16x16xf32>
    %62 = math.exp %61 : vector<16x16xf32>
    %cst_18 = arith.constant dense<0.000000e+00> : vector<16xf32>
    %63 = vector.multi_reduction <add>, %62, %cst_18 [1] : vector<16x16xf32> to vector<16xf32>
    %64 = vector.shape_cast %63 : vector<16xf32> to vector<16x1xf32>
    %65 = tpu.reciprocal %64 {approx = true} : vector<16x1xf32> -> vector<16x1xf32>
    %66 = vector.broadcast %65 : vector<16x1xf32> to vector<16x16xf32>
    %67 = arith.mulf %62, %66 : vector<16x16xf32>
    %68 = arith.truncf %67 : vector<16x16xf32> to vector<16x16xbf16>
    %cst_19 = arith.constant dense<0.000000e+00> : vector<16x32xf32>
    %69 = tpu.matmul %68, %53, %cst_19 {dimension_numbers = #tpu.dot_dimension_numbers<[1], [0], [0], [1], [0, 0, 1, 1], [], []>} : vector<16x16xbf16>, vector<16x32xbf16>, vector<16x32xf32> -> vector<16x32xf32>
    %70 = vector.extract_strided_slice %29 {offsets = [0, 64], sizes = [16, 32], strides = [1, 1]} : vector<16x128xbf16> to vector<16x32xbf16>
    %71 = vector.extract_strided_slice %30 {offsets = [0, 64], sizes = [16, 32], strides = [1, 1]} : vector<16x128xbf16> to vector<16x32xbf16>
    %72 = vector.extract_strided_slice %31 {offsets = [0, 64], sizes = [16, 32], strides = [1, 1]} : vector<16x128xbf16> to vector<16x32xbf16>
    %cst_20 = arith.constant dense<0.000000e+00> : vector<16x16xf32>
    %73 = tpu.matmul %70, %71, %cst_20 {dimension_numbers = #tpu.dot_dimension_numbers<[1], [1], [0], [0], [0, 0, 1, 0], [], []>} : vector<16x32xbf16>, vector<16x32xbf16>, vector<16x16xf32> -> vector<16x16xf32>
    %cst_21 = arith.constant 0.176776692 : f32
    %74 = vector.broadcast %cst_21 : f32 to vector<16x16xf32>
    %75 = arith.mulf %73, %74 : vector<16x16xf32>
    %76 = arith.addf %75, %28 : vector<16x16xf32>
    %cst_22 = arith.constant dense<0xFF800000> : vector<16xf32>
    %77 = vector.multi_reduction <maximumf>, %76, %cst_22 [1] : vector<16x16xf32> to vector<16xf32>
    %78 = vector.shape_cast %77 : vector<16xf32> to vector<16x1xf32>
    %79 = vector.broadcast %78 : vector<16x1xf32> to vector<16x16xf32>
    %80 = arith.subf %76, %79 : vector<16x16xf32>
    %81 = math.exp %80 : vector<16x16xf32>
    %cst_23 = arith.constant dense<0.000000e+00> : vector<16xf32>
    %82 = vector.multi_reduction <add>, %81, %cst_23 [1] : vector<16x16xf32> to vector<16xf32>
    %83 = vector.shape_cast %82 : vector<16xf32> to vector<16x1xf32>
    %84 = tpu.reciprocal %83 {approx = true} : vector<16x1xf32> -> vector<16x1xf32>
    %85 = vector.broadcast %84 : vector<16x1xf32> to vector<16x16xf32>
    %86 = arith.mulf %81, %85 : vector<16x16xf32>
    %87 = arith.truncf %86 : vector<16x16xf32> to vector<16x16xbf16>
    %cst_24 = arith.constant dense<0.000000e+00> : vector<16x32xf32>
    %88 = tpu.matmul %87, %72, %cst_24 {dimension_numbers = #tpu.dot_dimension_numbers<[1], [0], [0], [1], [0, 0, 1, 1], [], []>} : vector<16x16xbf16>, vector<16x32xbf16>, vector<16x32xf32> -> vector<16x32xf32>
    %89 = vector.extract_strided_slice %29 {offsets = [0, 96], sizes = [16, 32], strides = [1, 1]} : vector<16x128xbf16> to vector<16x32xbf16>
    %90 = vector.extract_strided_slice %30 {offsets = [0, 96], sizes = [16, 32], strides = [1, 1]} : vector<16x128xbf16> to vector<16x32xbf16>
    %91 = vector.extract_strided_slice %31 {offsets = [0, 96], sizes = [16, 32], strides = [1, 1]} : vector<16x128xbf16> to vector<16x32xbf16>
    %cst_25 = arith.constant dense<0.000000e+00> : vector<16x16xf32>
    %92 = tpu.matmul %89, %90, %cst_25 {dimension_numbers = #tpu.dot_dimension_numbers<[1], [1], [0], [0], [0, 0, 1, 0], [], []>} : vector<16x32xbf16>, vector<16x32xbf16>, vector<16x16xf32> -> vector<16x16xf32>
    %cst_26 = arith.constant 0.176776692 : f32
    %93 = vector.broadcast %cst_26 : f32 to vector<16x16xf32>
    %94 = arith.mulf %92, %93 : vector<16x16xf32>
    %95 = arith.addf %94, %28 : vector<16x16xf32>
    %cst_27 = arith.constant dense<0xFF800000> : vector<16xf32>
    %96 = vector.multi_reduction <maximumf>, %95, %cst_27 [1] : vector<16x16xf32> to vector<16xf32>
    %97 = vector.shape_cast %96 : vector<16xf32> to vector<16x1xf32>
    %98 = vector.broadcast %97 : vector<16x1xf32> to vector<16x16xf32>
    %99 = arith.subf %95, %98 : vector<16x16xf32>
    %100 = math.exp %99 : vector<16x16xf32>
    %cst_28 = arith.constant dense<0.000000e+00> : vector<16xf32>
    %101 = vector.multi_reduction <add>, %100, %cst_28 [1] : vector<16x16xf32> to vector<16xf32>
    %102 = vector.shape_cast %101 : vector<16xf32> to vector<16x1xf32>
    %103 = tpu.reciprocal %102 {approx = true} : vector<16x1xf32> -> vector<16x1xf32>
    %104 = vector.broadcast %103 : vector<16x1xf32> to vector<16x16xf32>
    %105 = arith.mulf %100, %104 : vector<16x16xf32>
    %106 = arith.truncf %105 : vector<16x16xf32> to vector<16x16xbf16>
    %cst_29 = arith.constant dense<0.000000e+00> : vector<16x32xf32>
    %107 = tpu.matmul %106, %91, %cst_29 {dimension_numbers = #tpu.dot_dimension_numbers<[1], [0], [0], [1], [0, 0, 1, 1], [], []>} : vector<16x16xbf16>, vector<16x32xbf16>, vector<16x32xf32> -> vector<16x32xf32>
    %108 = tpu.concatenate %50, %69, %88, %107 in 1 : vector<16x32xf32>, vector<16x32xf32>, vector<16x32xf32>, vector<16x32xf32> -> vector<16x128xf32>
    %109 = vector.extract_strided_slice %22 {offsets = [16, 0], sizes = [16, 128], strides = [1, 1]} : vector<32x384xbf16> to vector<16x128xbf16>
    %110 = vector.extract_strided_slice %22 {offsets = [16, 128], sizes = [16, 128], strides = [1, 1]} : vector<32x384xbf16> to vector<16x128xbf16>
    %111 = vector.extract_strided_slice %22 {offsets = [16, 256], sizes = [16, 128], strides = [1, 1]} : vector<32x384xbf16> to vector<16x128xbf16>
    %112 = vector.extract_strided_slice %109 {offsets = [0, 0], sizes = [16, 32], strides = [1, 1]} : vector<16x128xbf16> to vector<16x32xbf16>
    %113 = vector.extract_strided_slice %110 {offsets = [0, 0], sizes = [16, 32], strides = [1, 1]} : vector<16x128xbf16> to vector<16x32xbf16>
    %114 = vector.extract_strided_slice %111 {offsets = [0, 0], sizes = [16, 32], strides = [1, 1]} : vector<16x128xbf16> to vector<16x32xbf16>
    %cst_30 = arith.constant dense<0.000000e+00> : vector<16x16xf32>
    %115 = tpu.matmul %112, %113, %cst_30 {dimension_numbers = #tpu.dot_dimension_numbers<[1], [1], [0], [0], [0, 0, 1, 0], [], []>} : vector<16x32xbf16>, vector<16x32xbf16>, vector<16x16xf32> -> vector<16x16xf32>
    %cst_31 = arith.constant 0.176776692 : f32
    %116 = vector.broadcast %cst_31 : f32 to vector<16x16xf32>
    %117 = arith.mulf %115, %116 : vector<16x16xf32>
    %118 = arith.addf %117, %28 : vector<16x16xf32>
    %cst_32 = arith.constant dense<0xFF800000> : vector<16xf32>
    %119 = vector.multi_reduction <maximumf>, %118, %cst_32 [1] : vector<16x16xf32> to vector<16xf32>
    %120 = vector.shape_cast %119 : vector<16xf32> to vector<16x1xf32>
    %121 = vector.broadcast %120 : vector<16x1xf32> to vector<16x16xf32>
    %122 = arith.subf %118, %121 : vector<16x16xf32>
    %123 = math.exp %122 : vector<16x16xf32>
    %cst_33 = arith.constant dense<0.000000e+00> : vector<16xf32>
    %124 = vector.multi_reduction <add>, %123, %cst_33 [1] : vector<16x16xf32> to vector<16xf32>
    %125 = vector.shape_cast %124 : vector<16xf32> to vector<16x1xf32>
    %126 = tpu.reciprocal %125 {approx = true} : vector<16x1xf32> -> vector<16x1xf32>
    %127 = vector.broadcast %126 : vector<16x1xf32> to vector<16x16xf32>
    %128 = arith.mulf %123, %127 : vector<16x16xf32>
    %129 = arith.truncf %128 : vector<16x16xf32> to vector<16x16xbf16>
    %cst_34 = arith.constant dense<0.000000e+00> : vector<16x32xf32>
    %130 = tpu.matmul %129, %114, %cst_34 {dimension_numbers = #tpu.dot_dimension_numbers<[1], [0], [0], [1], [0, 0, 1, 1], [], []>} : vector<16x16xbf16>, vector<16x32xbf16>, vector<16x32xf32> -> vector<16x32xf32>
    %131 = vector.extract_strided_slice %109 {offsets = [0, 32], sizes = [16, 32], strides = [1, 1]} : vector<16x128xbf16> to vector<16x32xbf16>
    %132 = vector.extract_strided_slice %110 {offsets = [0, 32], sizes = [16, 32], strides = [1, 1]} : vector<16x128xbf16> to vector<16x32xbf16>
    %133 = vector.extract_strided_slice %111 {offsets = [0, 32], sizes = [16, 32], strides = [1, 1]} : vector<16x128xbf16> to vector<16x32xbf16>
    %cst_35 = arith.constant dense<0.000000e+00> : vector<16x16xf32>
    %134 = tpu.matmul %131, %132, %cst_35 {dimension_numbers = #tpu.dot_dimension_numbers<[1], [1], [0], [0], [0, 0, 1, 0], [], []>} : vector<16x32xbf16>, vector<16x32xbf16>, vector<16x16xf32> -> vector<16x16xf32>
    %cst_36 = arith.constant 0.176776692 : f32
    %135 = vector.broadcast %cst_36 : f32 to vector<16x16xf32>
    %136 = arith.mulf %134, %135 : vector<16x16xf32>
    %137 = arith.addf %136, %28 : vector<16x16xf32>
    %cst_37 = arith.constant dense<0xFF800000> : vector<16xf32>
    %138 = vector.multi_reduction <maximumf>, %137, %cst_37 [1] : vector<16x16xf32> to vector<16xf32>
    %139 = vector.shape_cast %138 : vector<16xf32> to vector<16x1xf32>
    %140 = vector.broadcast %139 : vector<16x1xf32> to vector<16x16xf32>
    %141 = arith.subf %137, %140 : vector<16x16xf32>
    %142 = math.exp %141 : vector<16x16xf32>
    %cst_38 = arith.constant dense<0.000000e+00> : vector<16xf32>
    %143 = vector.multi_reduction <add>, %142, %cst_38 [1] : vector<16x16xf32> to vector<16xf32>
    %144 = vector.shape_cast %143 : vector<16xf32> to vector<16x1xf32>
    %145 = tpu.reciprocal %144 {approx = true} : vector<16x1xf32> -> vector<16x1xf32>
    %146 = vector.broadcast %145 : vector<16x1xf32> to vector<16x16xf32>
    %147 = arith.mulf %142, %146 : vector<16x16xf32>
    %148 = arith.truncf %147 : vector<16x16xf32> to vector<16x16xbf16>
    %cst_39 = arith.constant dense<0.000000e+00> : vector<16x32xf32>
    %149 = tpu.matmul %148, %133, %cst_39 {dimension_numbers = #tpu.dot_dimension_numbers<[1], [0], [0], [1], [0, 0, 1, 1], [], []>} : vector<16x16xbf16>, vector<16x32xbf16>, vector<16x32xf32> -> vector<16x32xf32>
    %150 = vector.extract_strided_slice %109 {offsets = [0, 64], sizes = [16, 32], strides = [1, 1]} : vector<16x128xbf16> to vector<16x32xbf16>
    %151 = vector.extract_strided_slice %110 {offsets = [0, 64], sizes = [16, 32], strides = [1, 1]} : vector<16x128xbf16> to vector<16x32xbf16>
    %152 = vector.extract_strided_slice %111 {offsets = [0, 64], sizes = [16, 32], strides = [1, 1]} : vector<16x128xbf16> to vector<16x32xbf16>
    %cst_40 = arith.constant dense<0.000000e+00> : vector<16x16xf32>
    %153 = tpu.matmul %150, %151, %cst_40 {dimension_numbers = #tpu.dot_dimension_numbers<[1], [1], [0], [0], [0, 0, 1, 0], [], []>} : vector<16x32xbf16>, vector<16x32xbf16>, vector<16x16xf32> -> vector<16x16xf32>
    %cst_41 = arith.constant 0.176776692 : f32
    %154 = vector.broadcast %cst_41 : f32 to vector<16x16xf32>
    %155 = arith.mulf %153, %154 : vector<16x16xf32>
    %156 = arith.addf %155, %28 : vector<16x16xf32>
    %cst_42 = arith.constant dense<0xFF800000> : vector<16xf32>
    %157 = vector.multi_reduction <maximumf>, %156, %cst_42 [1] : vector<16x16xf32> to vector<16xf32>
    %158 = vector.shape_cast %157 : vector<16xf32> to vector<16x1xf32>
    %159 = vector.broadcast %158 : vector<16x1xf32> to vector<16x16xf32>
    %160 = arith.subf %156, %159 : vector<16x16xf32>
    %161 = math.exp %160 : vector<16x16xf32>
    %cst_43 = arith.constant dense<0.000000e+00> : vector<16xf32>
    %162 = vector.multi_reduction <add>, %161, %cst_43 [1] : vector<16x16xf32> to vector<16xf32>
    %163 = vector.shape_cast %162 : vector<16xf32> to vector<16x1xf32>
    %164 = tpu.reciprocal %163 {approx = true} : vector<16x1xf32> -> vector<16x1xf32>
    %165 = vector.broadcast %164 : vector<16x1xf32> to vector<16x16xf32>
    %166 = arith.mulf %161, %165 : vector<16x16xf32>
    %167 = arith.truncf %166 : vector<16x16xf32> to vector<16x16xbf16>
    %cst_44 = arith.constant dense<0.000000e+00> : vector<16x32xf32>
    %168 = tpu.matmul %167, %152, %cst_44 {dimension_numbers = #tpu.dot_dimension_numbers<[1], [0], [0], [1], [0, 0, 1, 1], [], []>} : vector<16x16xbf16>, vector<16x32xbf16>, vector<16x32xf32> -> vector<16x32xf32>
    %169 = vector.extract_strided_slice %109 {offsets = [0, 96], sizes = [16, 32], strides = [1, 1]} : vector<16x128xbf16> to vector<16x32xbf16>
    %170 = vector.extract_strided_slice %110 {offsets = [0, 96], sizes = [16, 32], strides = [1, 1]} : vector<16x128xbf16> to vector<16x32xbf16>
    %171 = vector.extract_strided_slice %111 {offsets = [0, 96], sizes = [16, 32], strides = [1, 1]} : vector<16x128xbf16> to vector<16x32xbf16>
    %cst_45 = arith.constant dense<0.000000e+00> : vector<16x16xf32>
    %172 = tpu.matmul %169, %170, %cst_45 {dimension_numbers = #tpu.dot_dimension_numbers<[1], [1], [0], [0], [0, 0, 1, 0], [], []>} : vector<16x32xbf16>, vector<16x32xbf16>, vector<16x16xf32> -> vector<16x16xf32>
    %cst_46 = arith.constant 0.176776692 : f32
    %173 = vector.broadcast %cst_46 : f32 to vector<16x16xf32>
    %174 = arith.mulf %172, %173 : vector<16x16xf32>
    %175 = arith.addf %174, %28 : vector<16x16xf32>
    %cst_47 = arith.constant dense<0xFF800000> : vector<16xf32>
    %176 = vector.multi_reduction <maximumf>, %175, %cst_47 [1] : vector<16x16xf32> to vector<16xf32>
    %177 = vector.shape_cast %176 : vector<16xf32> to vector<16x1xf32>
    %178 = vector.broadcast %177 : vector<16x1xf32> to vector<16x16xf32>
    %179 = arith.subf %175, %178 : vector<16x16xf32>
    %180 = math.exp %179 : vector<16x16xf32>
    %cst_48 = arith.constant dense<0.000000e+00> : vector<16xf32>
    %181 = vector.multi_reduction <add>, %180, %cst_48 [1] : vector<16x16xf32> to vector<16xf32>
    %182 = vector.shape_cast %181 : vector<16xf32> to vector<16x1xf32>
    %183 = tpu.reciprocal %182 {approx = true} : vector<16x1xf32> -> vector<16x1xf32>
    %184 = vector.broadcast %183 : vector<16x1xf32> to vector<16x16xf32>
    %185 = arith.mulf %180, %184 : vector<16x16xf32>
    %186 = arith.truncf %185 : vector<16x16xf32> to vector<16x16xbf16>
    %cst_49 = arith.constant dense<0.000000e+00> : vector<16x32xf32>
    %187 = tpu.matmul %186, %171, %cst_49 {dimension_numbers = #tpu.dot_dimension_numbers<[1], [0], [0], [1], [0, 0, 1, 1], [], []>} : vector<16x16xbf16>, vector<16x32xbf16>, vector<16x32xf32> -> vector<16x32xf32>
    %188 = tpu.concatenate %130, %149, %168, %187 in 1 : vector<16x32xf32>, vector<16x32xf32>, vector<16x32xf32>, vector<16x32xf32> -> vector<16x128xf32>
    %189 = tpu.concatenate %108, %188 in 0 : vector<16x128xf32>, vector<16x128xf32> -> vector<32x128xf32>
    %190 = arith.truncf %189 : vector<32x128xf32> to vector<32x128xbf16>
    %cst_50 = arith.constant dense<0.000000e+00> : vector<32x128xf32>
    %191 = tpu.matmul %190, %6, %cst_50 {dimension_numbers = #tpu.dot_dimension_numbers<[1], [0], [0], [1], [0, 0, 1, 1], [], []>} : vector<32x128xbf16>, vector<128x128xbf16>, vector<32x128xf32> -> vector<32x128xf32>
    %192 = arith.addf %0, %191 : vector<32x128xf32>
    %193 = arith.mulf %192, %192 : vector<32x128xf32>
    %cst_51 = arith.constant dense<0.000000e+00> : vector<32xf32>
    %194 = vector.multi_reduction <add>, %193, %cst_51 [1] : vector<32x128xf32> to vector<32xf32>
    %195 = vector.shape_cast %194 : vector<32xf32> to vector<32x1xf32>
    %cst_52 = arith.constant 1.280000e+02 : f32
    %196 = vector.broadcast %cst_52 : f32 to vector<32x1xf32>
    %197 = arith.divf %195, %196 : vector<32x1xf32>
    %cst_53 = arith.constant 9.99999997E-7 : f32
    %198 = vector.broadcast %cst_53 : f32 to vector<32x1xf32>
    %199 = arith.addf %197, %198 : vector<32x1xf32>
    %200 = math.rsqrt %199 : vector<32x1xf32>
    %201 = vector.broadcast %200 : vector<32x1xf32> to vector<32x128xf32>
    %202 = arith.mulf %192, %201 : vector<32x128xf32>
    %203 = vector.broadcast %3 : vector<1x128xf32> to vector<32x128xf32>
    %204 = arith.mulf %202, %203 : vector<32x128xf32>
    %205 = arith.truncf %204 : vector<32x128xf32> to vector<32x128xbf16>
    %cst_54 = arith.constant dense<0.000000e+00> : vector<32x512xf32>
    %206 = tpu.matmul %205, %7, %cst_54 {dimension_numbers = #tpu.dot_dimension_numbers<[1], [0], [0], [1], [0, 0, 1, 1], [], []>} : vector<32x128xbf16>, vector<128x512xbf16>, vector<32x512xf32> -> vector<32x512xf32>
    %207 = vector.extract_strided_slice %206 {offsets = [0, 0], sizes = [32, 256], strides = [1, 1]} : vector<32x512xf32> to vector<32x256xf32>
    %208 = vector.extract_strided_slice %206 {offsets = [0, 256], sizes = [32, 256], strides = [1, 1]} : vector<32x512xf32> to vector<32x256xf32>
    %209 = arith.negf %207 : vector<32x256xf32>
    %210 = math.exp %209 : vector<32x256xf32>
    %cst_55 = arith.constant 1.000000e+00 : f32
    %211 = vector.broadcast %cst_55 : f32 to vector<32x256xf32>
    %212 = arith.addf %211, %210 : vector<32x256xf32>
    %213 = arith.divf %211, %212 : vector<32x256xf32>
    %214 = arith.mulf %207, %213 : vector<32x256xf32>
    %215 = arith.mulf %214, %208 : vector<32x256xf32>
    %216 = arith.truncf %215 : vector<32x256xf32> to vector<32x256xbf16>
    %c0_56 = arith.constant 0 : index
    %c0_57 = arith.constant 0 : index
    %217 = vector.load %arg3[%c0_56, %c0_57] : memref<256x128xbf16, #tpu.memory_space<vmem>>, vector<256x128xbf16>
    %cst_58 = arith.constant dense<0.000000e+00> : vector<32x128xf32>
    %218 = tpu.matmul %216, %217, %cst_58 {dimension_numbers = #tpu.dot_dimension_numbers<[1], [0], [0], [1], [0, 0, 1, 1], [], []>} : vector<32x256xbf16>, vector<256x128xbf16>, vector<32x128xf32> -> vector<32x128xf32>
    %219 = arith.addf %192, %218 : vector<32x128xf32>
    %c0_59 = arith.constant 0 : index
    %c0_60 = arith.constant 0 : index
    %220 = vector.load %arg4[%c0_59, %c0_60] : memref<32x128xf32, #tpu.memory_space<vmem>>, vector<32x128xf32>
    tpu.vector_store %arg4[%c0_59, %c0_60], %219 {strides = array<i32>} : memref<32x128xf32, #tpu.memory_space<vmem>>, vector<32x128xf32>,
    return
  }
}

</mosaic_0001>

<bundles_post_ra>
// kernel: tpu_custom_call.1
= control target key start
LH: loop header
LB: loop body
LE: loop exit
PB: predicated region body
PF: predicated region fallthrough
CT: control target
= control target key end

     0   :  { %9 = vsyncpa [#allocation3], 0  ;;  %s2954_s0 = inlined_call_operand.hbm [shape: f32[32,128], index: 0, kind: input, shape index: {}]   ;;  %s2955_s1 = inlined_call_operand.hbm [shape: f32[2,128], index: 1, kind: input, shape index: {}]   ;;  %s2956_s2 = inlined_call_operand.hbm [shape: bf16[128,1024], index: 2, kind: input, shape index: {}]   ;;  %s2957_s3 = inlined_call_operand.hbm [shape: bf16[256,128], index: 3, kind: input, shape index: {}]   ;;  %s2958_s4 = inlined_call_operand.hbm [shape: f32[32,128], index: 4, kind: output, shape index: {}]  }
   0x1   :  { %10 = vsyncpa [#allocation6], 0 }
   0x2   :  { %11 = vsyncpa [#allocation9], 0  ;;  %s31_s17 = sshll.u32 %s2955_s1, 4  ;;  %s32_s17 = int_to_ptr.hbm [resolvable:$true] %s31_s17 }
   0x3   :  { %12 = vsyncpa [#allocation4], 0  ;;  %s2519_s18 = smov [#allocation5]   ;;  %s17_s22 = sshll.u32 %s2954_s0, 4  ;;  %s18_s22 = int_to_ptr.hbm [resolvable:$true] %s17_s22 }
   0x4   :  { %s33_s19 = sshll.u32 %s2519_s18, 4  ;;  %s2520_s23 = smov [#allocation2]   ;;  %s34_s19 = int_to_ptr.vmem [resolvable:$true] %s33_s19 }
   0x5   :  { %36 = dma.hbm_to_vmem [thread:$0]  %s32_s17, 32, %s34_s19, [#allocation6]  }
   0x6   :  { %s19_s24 = sshll.u32 %s2520_s23, 4  ;;  %s2521_s25 = smov 128   ;;  %s20_s24 = int_to_ptr.vmem [resolvable:$true] %s19_s24 }
   0x7   :  { %s2522_s26 = smov 8   ;;  %s41_s28 = sshll.u32 %s2956_s2, 4  ;;  %s42_s28 = int_to_ptr.hbm [resolvable:$true] %s41_s28 }
   0x8   :  { %25 = dma.hbm_to_vmem [thread:$0]  %s18_s22, 512, %s20_s24, [#allocation3], %s2521_s25, %s2521_s25, %s2522_s26  }
   0x9   :  { %s2523_s29 = smov [#allocation7]   ;;  %s54_s6 = sshll.u32 %s2957_s3, 4  ;;  %s55_s6 = int_to_ptr.hbm [resolvable:$true] %s54_s6 }
   0xa   :  { %s43_s30 = sshll.u32 %s2523_s29, 4  ;;  %s2524_s7 = smov 512   ;;  %s44_s30 = int_to_ptr.vmem [resolvable:$true] %s43_s30 }
   0xb   :  { %s2525_s8 = smov 32   ;;  %s2526_s9 = smov [#allocation8]  }
   0xc   :  { %49 = dma.hbm_to_vmem [thread:$0]  %s42_s28, 8192, %s44_s30, [#allocation6], %s2524_s7, %s2524_s7, %s2525_s8  }
   0xd   :  { %s56_s10 = sshll.u32 %s2526_s9, 4  ;;  %s2527_s11 = smov 64   ;;  %s57_s10 = int_to_ptr.vmem [resolvable:$true] %s56_s10 }
   0xe   :  { %s2528_s12 = smov 4  }
   0xf   :  { %62 = dma.hbm_to_vmem [thread:$0]  %s55_s6, 2048, %s57_s10, [#allocation9], %s2527_s11, %s2527_s11, %s2528_s12  }
  0x10   :  { %2511 = dma.done.wait [#allocation3], 512  }
  0x11   :  { %2512 = vsyncadd [#allocation3], 4294966784 }
  0x12   :  { %2513 = dma.done.wait [#allocation6], 8224  }
  0x13   :  { %2514 = vsyncadd [#allocation6], 4294959072 }
  0x14   :  { %2515 = dma.done.wait [#allocation9], 2048  }
  0x15   :  { %2516 = vsyncadd [#allocation9], 4294965248  ;;  %v2576_v0 = vld [vmem:[#allocation2] sm:$0xff]  ;;  %v2580_v2 = vld [vmem:[#allocation2 + $0x8] sm:$0xff]  ;;  %v2529_v11 = vmov 128.0   ;;  %vm437_vm7 = vcmask 261120  }
  0x16   :  { %v149_v1 = vmul.f32 %v2576_v0, %v2576_v0  ;;  %v150_v3 = vmul.f32 %v2580_v2, %v2580_v2  ;;  %v1892_v4 = vld [vmem:[#allocation7 + $0x1c0] sm:$0xf]  ;;  %v2206_v6 = vld [vmem:[#allocation7 + $0x1c4] sm:$0xf]  ;;  %v1900_v9 = vld [vmem:[#allocation7 + $0x1c8] sm:$0xf]  ;;  %2274 = vrcp.f32 %v2529_v11 }
  0x17   :  { %v2210_v5 = vld [vmem:[#allocation7 + $0x1dc] sm:$0xf0]  ;;  %v1894_v8 = vld [vmem:[#allocation7 + $0x1e0] sm:$0xf0]  ;;  %v2211_v10 = vld [vmem:[#allocation7 + $0x1e4] sm:$0xf0] }
  0x18   :  { %153 = vadd.xlane.f32.xlu0 %v149_v1  ;;  %v1893_v7 = vor.u32 %v2210_v5, %v1892_v4  ;;  %v1897_v12 = vor.u32 %v2206_v6, %v1894_v8  ;;  %v1901_v13 = vor.u32 %v2211_v10, %v1900_v9  ;;  %v1880_v14 = vld [vmem:[#allocation7 + $0x180] sm:$0xf]  ;;  %v2198_v16 = vld [vmem:[#allocation7 + $0x184] sm:$0xf]  ;;  %v1888_v19 = vld [vmem:[#allocation7 + $0x188] sm:$0xf] }
  0x19   :  { %v2202_v15 = vld [vmem:[#allocation7 + $0x19c] sm:$0xf0]  ;;  %v1882_v18 = vld [vmem:[#allocation7 + $0x1a0] sm:$0xf0]  ;;  %v2203_v20 = vld [vmem:[#allocation7 + $0x1a4] sm:$0xf0] }
  0x1a   :  { %355 = vmatpush.bf16.msra.mxu0 %v1893_v7  ;;  %374 = vmatpush.bf16.msra.mxu1 %v1897_v12  ;;  %v1881_v17 = vor.u32 %v2202_v15, %v1880_v14  ;;  %v1885_v21 = vor.u32 %v2198_v16, %v1882_v18  ;;  %v1889_v22 = vor.u32 %v2203_v20, %v1888_v19  ;;  %v1868_v24 = vld [vmem:[#allocation7 + $0x140] sm:$0xf]  ;;  %v2190_v26 = vld [vmem:[#allocation7 + $0x144] sm:$0xf]  ;;  %v1876_v29 = vld [vmem:[#allocation7 + $0x148] sm:$0xf] }
  0x1b   :  { %393 = vmatpush.bf16.msra.mxu2 %v1901_v13  ;;  %v2194_v25 = vld [vmem:[#allocation7 + $0x15c] sm:$0xf0]  ;;  %v1870_v28 = vld [vmem:[#allocation7 + $0x160] sm:$0xf0]  ;;  %v2195_v30 = vld [vmem:[#allocation7 + $0x164] sm:$0xf0] }
  0x1c   :  { %v2584_v23 = vpop.eup %2274  ;;  %v1869_v27 = vor.u32 %v2194_v25, %v1868_v24  ;;  %v1873_v31 = vor.u32 %v2190_v26, %v1870_v28  ;;  %v1877_v32 = vor.u32 %v2195_v30, %v1876_v29  ;;  %v1856_v34 = vld [vmem:[#allocation7 + $0x100] sm:$0xf]  ;;  %v2182_v36 = vld [vmem:[#allocation7 + $0x104] sm:$0xf]  ;;  %v1864_v39 = vld [vmem:[#allocation7 + $0x108] sm:$0xf] }
  0x1d   :  { %v162_v33 = vmul.f32 128.0, %v2584_v23  ;;  %v2186_v35 = vld [vmem:[#allocation7 + $0x11c] sm:$0xf0]  ;;  %v1858_v38 = vld [vmem:[#allocation7 + $0x120] sm:$0xf0]  ;;  %vm166_vm0 = vweird.f32 %v2584_v23  ;;  %s2530_s2 = smov 96  }
  0x1e   :  { %356 = vmatpush.bf16.msra.mxu0 %v1881_v17  ;;  %375 = vmatpush.bf16.msra.mxu1 %v1885_v21  ;;  %v1857_v37 = vor.u32 %v2186_v35, %v1856_v34  ;;  %v2187_v40 = vld [vmem:[#allocation7 + $0x124] sm:$0xf0]  ;;  %v1861_v41 = vor.u32 %v2182_v36, %v1858_v38  ;;  %v1844_v44 = vld [vmem:[#allocation7 + $0xc0] sm:$0xf]  ;;  %v2174_v46 = vld [vmem:[#allocation7 + $0xc4] sm:$0xf] }
  0x1f   :  { %394 = vmatpush.bf16.msra.mxu2 %v1889_v22  ;;  %v1865_v42 = vor.u32 %v2187_v40, %v1864_v39  ;;  %v163_v43 = vsub.f32 1.0, %v162_v33  ;;  %v2178_v45 = vld [vmem:[#allocation7 + $0xdc] sm:$0xf0]  ;;  %v1846_v48 = vld [vmem:[#allocation7 + $0xe0] sm:$0xf0]  ;;  %vm462_vm9 = vcmask 130048  }
  0x20   :  { %155 = vadd.xlane.f32.xlu0 %v150_v3  ;;  %v1845_v47 = vor.u32 %v2178_v45, %v1844_v44  ;;  %v1852_v49 = vld [vmem:[#allocation7 + $0xc8] sm:$0xf]  ;;  %v1849_v51 = vor.u32 %v2174_v46, %v1846_v48  ;;  %v1832_v54 = vld [vmem:[#allocation7 + $0x80] sm:$0xf]  ;;  %v2166_v56 = vld [vmem:[#allocation7 + $0x84] sm:$0xf] }
  0x21   :  { %v2179_v50 = vld [vmem:[#allocation7 + $0xe4] sm:$0xf0]  ;;  %v164_v53 = vmul.f32 %v2584_v23, %v163_v43  ;;  %v2170_v55 = vld [vmem:[#allocation7 + $0x9c] sm:$0xf0]  ;;  %v1834_v58 = vld [vmem:[#allocation7 + $0xa0] sm:$0xf0] }
  0x22   :  { %357 = vmatpush.bf16.msra.mxu0 %v1869_v27  ;;  %376 = vmatpush.bf16.msra.mxu1 %v1873_v31  ;;  %v1853_v52 = vor.u32 %v2179_v50, %v1852_v49  ;;  %v1833_v57 = vor.u32 %v2170_v55, %v1832_v54  ;;  %v1840_v59 = vld [vmem:[#allocation7 + $0x88] sm:$0xf]  ;;  %v1837_v61 = vor.u32 %v2166_v56, %v1834_v58  ;;  %v1820_v1 = vld [vmem:[#allocation7 + $0x40] sm:$0xf]  ;;  %v2158_v4 = vld [vmem:[#allocation7 + $0x44] sm:$0xf] }
  0x23   :  { %395 = vmatpush.bf16.msra.mxu2 %v1877_v32  ;;  %v2171_v60 = vld [vmem:[#allocation7 + $0xa4] sm:$0xf0]  ;;  %v165_v63 = vadd.f32 %v2584_v23, %v164_v53  ;;  %v2162_v3 = vld [vmem:[#allocation7 + $0x5c] sm:$0xf0]  ;;  %v1822_v6 = vld [vmem:[#allocation7 + $0x60] sm:$0xf0] }
  0x24   :  { %v1841_v62 = vor.u32 %v2171_v60, %v1840_v59  ;;  %v1821_v5 = vor.u32 %v2162_v3, %v1820_v1  ;;  %v1828_v7 = vld [vmem:[#allocation7 + $0x48] sm:$0xf]  ;;  %v1825_v9 = vor.u32 %v2158_v4, %v1822_v6  ;;  %v1808_v12 = vld [vmem:[#allocation7] sm:$0xf]  ;;  %v2150_v14 = vld [vmem:[#allocation7 + $0x4] sm:$0xf]  ;;  %v420_v6 = vlaneseq }
  0x25   :  { %v2163_v8 = vld [vmem:[#allocation7 + $0x64] sm:$0xf0]  ;;  %v2591_v11 = vsel %vm166_vm0, %v2584_v23, %v165_v63  ;;  %v2154_v13 = vld [vmem:[#allocation7 + $0x1c] sm:$0xf0]  ;;  %v1810_v16 = vld [vmem:[#allocation7 + $0x20] sm:$0xf0] }
  0x26   :  { %358 = vmatpush.bf16.msra.mxu0 %v1857_v37  ;;  %377 = vmatpush.bf16.msra.mxu1 %v1861_v41  ;;  %v1829_v10 = vor.u32 %v2163_v8, %v1828_v7  ;;  %v1809_v15 = vor.u32 %v2154_v13, %v1808_v12  ;;  %v1816_v17 = vld [vmem:[#allocation7 + $0x8] sm:$0xf]  ;;  %v1813_v20 = vor.u32 %v2150_v14, %v1810_v16  ;;  %v84_v39 = vld [vmem:[#allocation5] sm:$0x3]  ;;  %v421_v7 = vshrl.u32 %v420_v6, 7  ;;  %s2532_s3 = smov [#allocation10]  }
  0x27   :  { %396 = vmatpush.bf16.msra.mxu2 %v1865_v42  ;;  %v2155_v18 = vld [vmem:[#allocation7 + $0x24] sm:$0xf0]  ;;  %v2596_v42 = vperm.slane %v84_v39, 0  ;;  %v424_v8 = vand.u32 127, %v420_v6  ;;  %s1789_s13 = sshll.u32 %s2532_s3, 4  ;;  %s1791_s16 = sshll.u32 %s2958_s4, 4  ;;  %s1790_s13 = int_to_ptr.vmem [resolvable:$true] %s1789_s13  ;;  %s1792_s16 = int_to_ptr.hbm [resolvable:$true] %s1791_s16 }
  0x28   :  { %v1817_v21 = vor.u32 %v2155_v18, %v1816_v17  ;;  %v422_v14 = vadd.s32 8, %v421_v7 }
  0x29   :  { %vm425_vm8 = vcmp.le.s32.totalorder %v424_v8, %v421_v7 }
  0x2a   :  { %359 = vmatpush.bf16.msra.mxu0 %v1845_v47  ;;  %378 = vmatpush.bf16.msra.mxu1 %v1849_v51  ;;  %vm426_vm10 = vcmp.le.s32.totalorder %v424_v8, %v422_v14 }
  0x2b   :  { %397 = vmatpush.bf16.msra.mxu2 %v1853_v52 }
  0x2e   :  { %360 = vmatpush.bf16.msra.mxu0 %v1833_v57  ;;  %379 = vmatpush.bf16.msra.mxu1 %v1837_v61 }
  0x2f   :  { %398 = vmatpush.bf16.msra.mxu2 %v1841_v62 }
  0x32   :  { %361 = vmatpush.bf16.msra.mxu0 %v1821_v5  ;;  %380 = vmatpush.bf16.msra.mxu1 %v1825_v9 }
  0x33   :  { %399 = vmatpush.bf16.msra.mxu2 %v1829_v10  ;;  %v2531_v10 = vmov -1e+30  }
  0x34   :  { %v2615_v12 = vsel %vm425_vm8, 0.0, %v2531_v10  ;;  %v2619_v18 = vsel %vm426_vm10, 0.0, %v2531_v10 }
  0x36   :  { %362 = vmatpush.bf16.msra.mxu0 %v1809_v15  ;;  %381 = vmatpush.bf16.msra.mxu1 %v1813_v20 }
  0x37   :  { %400 = vmatpush.bf16.msra.mxu2 %v1817_v21 }
  0x8b   :  { %v154_v19 = vpop.xlane.xlu0 %153 }
  0x8c   :  { %v168_v22 = vmul.f32 %v2591_v11, %v154_v19 }
  0x8e   :  { %v172_v24 = vadd.f32 1e-06, %v168_v22 }
  0x90   :  { %2276 = vrsqrt.f32 %v172_v24  ;;  %vm182_vm2 = vweird.f32 %v172_v24 }
  0x93   :  { %v156_v23 = vpop.xlane.xlu0 %155 }
  0x94   :  { %v169_v25 = vmul.f32 %v2591_v11, %v156_v23 }
  0x96   :  { %v2277_v26 = vpop.eup %2276  ;;  %v173_v27 = vadd.f32 1e-06, %v169_v25 }
  0x97   :  { %v177_v28 = vmul.f32 %v2277_v26, %v172_v24  ;;  %vm183_vm1 = vweird.f32 %v2277_v26 }
  0x98   :  { %2278 = vrsqrt.f32 %v173_v27  ;;  %vm184_vm3 = vmor %vm182_vm2, %vm183_vm1  ;;  %vm192_vm5 = vweird.f32 %v173_v27  ;;  %vm748_vm1 = vcmask 523264   ;;  %vm751_vm2 = vcmask 785408  }
  0x99   :  { %v178_v29 = vmul.f32 %v2277_v26, %v177_v28 }
  0x9b   :  { %v179_v30 = vmul.f32 0.5, %v178_v29 }
  0x9d   :  { %v180_v31 = vsub.f32 1.5, %v179_v30 }
  0x9e   :  { %v2279_v32 = vpop.eup %2278 }
  0x9f   :  { %v187_v33 = vmul.f32 %v2279_v32, %v173_v27  ;;  %v181_v34 = vmul.f32 %v2277_v26, %v180_v31  ;;  %vm193_vm4 = vweird.f32 %v2279_v32 }
  0xa0   :  { %vm194_vm6 = vmor %vm192_vm5, %vm193_vm4 }
  0xa1   :  { %v188_v35 = vmul.f32 %v2279_v32, %v187_v33  ;;  %v185_v37 = vsel %vm184_vm3, %v2277_v26, %v181_v34  ;;  %v2631_v34 = vld [vmem:[#allocation2 + $0x18] sm:$0xff] }
  0xa2   :  { %v216_v41 = vmul.f32 %v185_v37, %v2576_v0 }
  0xa3   :  { %v189_v36 = vmul.f32 0.5, %v188_v35  ;;  %v152_v35 = vmul.f32 %v2631_v34, %v2631_v34 }
  0xa4   :  { %v221_v45 = vmul.f32 %v2596_v42, %v216_v41 }
  0xa5   :  { %v190_v38 = vsub.f32 1.5, %v189_v36 }
  0xa7   :  { %v191_v40 = vmul.f32 %v2279_v32, %v190_v38 }
  0xa9   :  { %v195_v43 = vsel %vm194_vm6, %v2279_v32, %v191_v40  ;;  %v2627_v32 = vld [vmem:[#allocation2 + $0x10] sm:$0xff] }
  0xaa   :  { %v217_v44 = vmul.f32 %v195_v43, %v2580_v2  ;;  %v151_v33 = vmul.f32 %v2627_v32, %v2627_v32 }
  0xac   :  { %v222_v46 = vmul.f32 %v2596_v42, %v217_v44 }
  0xae   :  { %v225_v47 = vpack.c.bf16 %v222_v46, %v221_v45 }
  0xb0   :  { %363 = vmatmul.bf16.vlgmr.msra.gmra.mxu0 %v225_v47  ;;  %382 = vmatmul.bf16.vlgmr.msra.gmra.mxu1 %v225_v47 }
  0xb1   :  { %401 = vmatmul.bf16.vlgmr.msra.gmra.mxu2 %v225_v47 }
 0x12d   :  { %v364_v48 = vpop.f32.mrf.mxu0  ;;  %v383_v49 = vpop.f32.mrf.mxu1 }
 0x12e   :  { %v412_v50 = vpack.c.bf16 %v383_v49, %v364_v48 }
 0x130   :  { %v434_v54 = vunpack.c.h.b16 %v412_v50  ;;  %v431_v63 = vunpack.c.l.b16 %v412_v50 }
 0x134   :  { %v402_v51 = vpop.f32.mrf.mxu2 }
 0x135   :  { %v366_v52 = vpop.f32.mrf.mxu0  ;;  %v385_v53 = vpop.f32.mrf.mxu1  ;;  %v413_v2 = vpack.c.bf16 %v402_v51, %v402_v51 }
 0x136   :  { %v414_v0 = vpack.c.bf16 %v385_v53, %v366_v52 }
 0x137   :  { %v488_v61 = vunpack.c.l.b16 %v413_v2 }
 0x138   :  { %v435_v55 = vunpack.c.h.b16 %v414_v0  ;;  %v432_v60 = vunpack.c.l.b16 %v414_v0 }
 0x13a   :  { %v2601_v56 = vpack.c.b16 %v435_v55, %v434_v54  ;;  %v2609_v3 = vpack.c.b16 %v432_v60, %v431_v63 }
 0x13c   :  { %v404_v57 = vpop.f32.mrf.mxu2  ;;  %511 = vrot.lane.b32.xlu0 %v2601_v56, %s2530_s2  ;;  %v442_v58 = vsel %vm437_vm7, %v2601_v56, 0 }
 0x13d   :  { %v415_v59 = vpack.c.bf16 %v404_v57, %v404_v57  ;;  %451 = vmatpush.bf16.xpose.msra.mxu3 %v442_v58 }
 0x13f   :  { %v489_v62 = vunpack.c.l.b16 %v415_v59 }
 0x141   :  { %v2607_v1 = vpack.c.b16 %v489_v62, %v488_v61 }
 0x144   :  { %1902 = vmatmul.msk.bf16.vlgmr.msra.gmra.mxu3 %vm437_vm7, %v2609_v3 }
 0x145   :  { %502 = vmatpush.bf16.msrb.mxu3 %v2607_v1 }
 0x1ae   :  { %v512_v4 = vpop.permute.xlu0 %511 }
 0x1af   :  { %v517_v5 = vsel %vm437_vm7, %v512_v4, 0 }
 0x1b0   :  { %526 = vmatpush.bf16.xpose.msra.mxu3 %v517_v5 }
 0x1c7   :  { %v453_v9 = vpop.f32.mrf.mxu3 }
 0x1c8   :  { %v458_v13 = vmul.f32 0.17677669, %v453_v9 }
 0x1ca   :  { %v460_v15 = vadd.f32 %v458_v13, %v2615_v12 }
 0x1cc   :  { %v463_v16 = vsel %vm462_vm9, %v460_v15, -inf }
 0x1cd   :  { %464 = vmax.xlane.f32.xlu1 %v463_v16 }
 0x1cf   :  { %v455_v17 = vpop.f32.mrf.mxu3 }
 0x1d0   :  { %v459_v19 = vmul.f32 0.17677669, %v455_v17 }
 0x1d2   :  { %v461_v20 = vadd.f32 %v459_v19, %v2619_v18 }
 0x1d4   :  { %v466_v21 = vsel %vm462_vm9, %v461_v20, -inf }
 0x1d5   :  { %467 = vmax.xlane.f32.xlu1 %v466_v21 }
 0x1ee   :  { %509 = vrot.lane.b32.xlu1 %v2609_v3, %s2530_s2 }
 0x240   :  { %v465_v22 = vpop.xlane.xlu1 %464 }
 0x241   :  { %v469_v24 = vsub.f32 %v460_v15, %v465_v22 }
 0x243   :  { %v471_v23 = vmul.f32 1.442695, %v469_v24 }
 0x245   :  { %2280 = vpow2.f32 %v471_v23 }
 0x248   :  { %v468_v25 = vpop.xlane.xlu1 %467 }
 0x249   :  { %v470_v26 = vsub.f32 %v461_v20, %v468_v25 }
 0x24b   :  { %v2281_v27 = vpop.eup %2280  ;;  %v473_v28 = vmul.f32 1.442695, %v470_v26 }
 0x24c   :  { %v475_v29 = vsel %vm462_vm9, %v2281_v27, 0.0 }
 0x24d   :  { %2282 = vpow2.f32 %v473_v28  ;;  %476 = vadd.xlane.f32.xlu2 %v475_v29 }
 0x253   :  { %v2283_v30 = vpop.eup %2282 }
 0x254   :  { %v478_v31 = vsel %vm462_vm9, %v2283_v30, 0.0 }
 0x255   :  { %479 = vadd.xlane.f32.xlu2 %v478_v31 }
 0x25d   :  { %157 = vadd.xlane.f32.xlu2 %v151_v33 }
 0x260   :  { %v510_v44 = vpop.permute.xlu1 %509 }
 0x265   :  { %159 = vadd.xlane.f32.xlu2 %v152_v35 }
 0x2c0   :  { %v477_v36 = vpop.xlane.xlu2 %476 }
 0x2c1   :  { %2284 = vrcp.f32 %v477_v36 }
 0x2c7   :  { %v2285_v38 = vpop.eup %2284 }
 0x2c8   :  { %v480_v37 = vpop.xlane.xlu2 %479  ;;  %v483_v40 = vmul.f32 %v2285_v38, %v2281_v27 }
 0x2c9   :  { %2286 = vrcp.f32 %v480_v37 }
 0x2cf   :  { %v2287_v39 = vpop.eup %2286 }
 0x2d0   :  { %v484_v41 = vmul.f32 %v2287_v39, %v2283_v30  ;;  %v158_v45 = vpop.xlane.xlu2 %157 }
 0x2d1   :  { %v170_v46 = vmul.f32 %v2591_v11, %v158_v45 }
 0x2d2   :  { %v485_v43 = vpack.c.bf16 %v484_v41, %v483_v40 }
 0x2d3   :  { %v174_v47 = vadd.f32 1e-06, %v170_v46 }
 0x2d4   :  { %1903 = vmatmul.msk.bf16.vlgmr.msrb.gmra.mxu3 %vm462_vm9, %v485_v43 }
 0x2d5   :  { %2288 = vrsqrt.f32 %v174_v47  ;;  %vm202_vm11 = vweird.f32 %v174_v47 }
 0x2d8   :  { %v160_v51 = vpop.xlane.xlu2 %159 }
 0x2d9   :  { %v171_v52 = vmul.f32 %v2591_v11, %v160_v51 }
 0x2db   :  { %v2289_v48 = vpop.eup %2288  ;;  %v175_v53 = vadd.f32 1e-06, %v171_v52 }
 0x2dc   :  { %v197_v49 = vmul.f32 %v2289_v48, %v174_v47  ;;  %vm203_vm12 = vweird.f32 %v2289_v48 }
 0x2dd   :  { %2290 = vrsqrt.f32 %v175_v53  ;;  %vm204_vm13 = vmor %vm202_vm11, %vm203_vm12  ;;  %vm212_vm14 = vweird.f32 %v175_v53 }
 0x2de   :  { %v198_v50 = vmul.f32 %v2289_v48, %v197_v49 }
 0x2e0   :  { %v199_v0 = vmul.f32 0.5, %v198_v50 }
 0x2e2   :  { %v200_v54 = vsub.f32 1.5, %v199_v0 }
 0x2e3   :  { %v2291_v55 = vpop.eup %2290 }
 0x2e4   :  { %1904 = vmatmul.msk.bf16.vlgmr.msra.gmra.mxu3 %vm437_vm7, %v510_v44  ;;  %v201_v2 = vmul.f32 %v2289_v48, %v200_v54  ;;  %v207_v57 = vmul.f32 %v2291_v55, %v175_v53  ;;  %vm213_vm15 = vweird.f32 %v2291_v55 }
 0x2e5   :  { %vm214_vm0 = vmor %vm212_vm14, %vm213_vm15 }
 0x2e6   :  { %v208_v58 = vmul.f32 %v2291_v55, %v207_v57  ;;  %v205_v59 = vsel %vm204_vm13, %v2289_v48, %v201_v2 }
 0x2e7   :  { %v218_v62 = vmul.f32 %v205_v59, %v2627_v32 }
 0x2e8   :  { %v209_v60 = vmul.f32 0.5, %v208_v58 }
 0x2e9   :  { %v223_v6 = vmul.f32 %v2596_v42, %v218_v62 }
 0x2ea   :  { %v210_v61 = vsub.f32 1.5, %v209_v60 }
 0x2ec   :  { %v211_v63 = vmul.f32 %v2291_v55, %v210_v61 }
 0x2ee   :  { %v215_v4 = vsel %vm214_vm0, %v2291_v55, %v211_v63 }
 0x2ef   :  { %v219_v5 = vmul.f32 %v215_v4, %v2631_v34 }
 0x2f1   :  { %v224_v7 = vmul.f32 %v2596_v42, %v219_v5 }
 0x2f3   :  { %v226_v8 = vpack.c.bf16 %v224_v7, %v223_v6 }
 0x2f5   :  { %368 = vmatmul.bf16.gmra.mxu0 %v226_v8  ;;  %387 = vmatmul.bf16.gmra.mxu1 %v226_v8 }
 0x2f6   :  { %406 = vmatmul.bf16.gmra.mxu2 %v226_v8 }
 0x357   :  { %v2643_v9 = vpop.f32.mrf.mxu3 }
 0x35f   :  { %v2645_v10 = vpop.f32.mrf.mxu3 }
 0x367   :  { %v528_v13 = vpop.f32.mrf.mxu3 }
 0x368   :  { %v533_v14 = vmul.f32 0.17677669, %v528_v13 }
 0x36a   :  { %v535_v15 = vadd.f32 %v533_v14, %v2615_v12 }
 0x36c   :  { %v537_v16 = vsel %vm462_vm9, %v535_v15, -inf }
 0x36d   :  { %538 = vmax.xlane.f32.xlu2 %v537_v16 }
 0x36f   :  { %v530_v17 = vpop.f32.mrf.mxu3 }
 0x370   :  { %v534_v19 = vmul.f32 0.17677669, %v530_v17 }
 0x372   :  { %v536_v20 = vadd.f32 %v534_v19, %v2619_v18  ;;  %v369_v21 = vpop.f32.mrf.mxu0  ;;  %v388_v22 = vpop.f32.mrf.mxu1 }
 0x373   :  { %v416_v24 = vpack.c.bf16 %v388_v22, %v369_v21 }
 0x374   :  { %v540_v42 = vsel %vm462_vm9, %v536_v20, -inf }
 0x375   :  { %541 = vmax.xlane.f32.xlu0 %v540_v42  ;;  %v759_v26 = vunpack.c.h.b16 %v416_v24  ;;  %v756_v30 = vunpack.c.l.b16 %v416_v24 }
 0x379   :  { %v2676_v58 = vpop.f32.mrf.mxu2 }
 0x37a   :  { %v371_v23 = vpop.f32.mrf.mxu0  ;;  %v390_v25 = vpop.f32.mrf.mxu1 }
 0x37b   :  { %v418_v27 = vpack.c.bf16 %v390_v25, %v371_v23 }
 0x37d   :  { %v760_v28 = vunpack.c.h.b16 %v418_v27  ;;  %v757_v31 = vunpack.c.l.b16 %v418_v27 }
 0x37f   :  { %v761_v29 = vpack.c.b16 %v760_v28, %v759_v26 }
 0x381   :  { %v766_v33 = vsel %vm437_vm7, %v761_v29, 0  ;;  %v2680_v5 = vpop.f32.mrf.mxu2 }
 0x382   :  { %775 = vmatpush.bf16.xpose.msrb.mxu0 %v766_v33 }
 0x385   :  { %560 = vrot.lane.b32.xlu2 %v2607_v1, %s2530_s2 }
 0x389   :  { %582 = vrot.lane.b32.xlu0 %v2601_v56, %s2527_s11 }
 0x38d   :  { %653 = vrot.lane.b32.xlu2 %v2601_v56, %s2525_s8  ;;  %v758_v56 = vpack.c.b16 %v757_v31, %v756_v30 }
 0x38f   :  { %1910 = vmatmul.msk.bf16.vlgmr.msrb.gmra.mxu0 %vm437_vm7, %v758_v56 }
 0x391   :  { %976 = vrot.lane.b32.xlu0 %v761_v29, %s2525_s8 }
 0x395   :  { %651 = vrot.lane.b32.xlu2 %v2609_v3, %s2525_s8 }
 0x399   :  { %905 = vrot.lane.b32.xlu0 %v761_v29, %s2527_s11 }
 0x3e0   :  { %v539_v35 = vpop.xlane.xlu2 %538 }
 0x3e1   :  { %v543_v36 = vsub.f32 %v535_v15, %v539_v35 }
 0x3e3   :  { %v545_v37 = vmul.f32 1.442695, %v543_v36 }
 0x3e5   :  { %2292 = vpow2.f32 %v545_v37 }
 0x3e8   :  { %v561_v38 = vpop.permute.xlu2 %560  ;;  %v542_v39 = vpop.xlane.xlu0 %541 }
 0x3e9   :  { %v544_v40 = vsub.f32 %v536_v20, %v542_v39  ;;  %573 = vmatpush.bf16.msrb.mxu3 %v561_v38 }
 0x3eb   :  { %v2293_v41 = vpop.eup %2292  ;;  %v547_v43 = vmul.f32 1.442695, %v544_v40 }
 0x3ec   :  { %v549_v44 = vsel %vm462_vm9, %v2293_v41, 0.0 }
 0x3ed   :  { %2294 = vpow2.f32 %v547_v43  ;;  %550 = vadd.xlane.f32.xlu2 %v549_v44 }
 0x3f0   :  { %v654_v45 = vpop.permute.xlu2 %653 }
 0x3f1   :  { %v659_v46 = vsel %vm437_vm7, %v654_v45, 0 }
 0x3f2   :  { %668 = vmatpush.bf16.xpose.msrb.mxu2 %v659_v46 }
 0x3f3   :  { %v2295_v47 = vpop.eup %2294 }
 0x3f4   :  { %v552_v48 = vsel %vm462_vm9, %v2295_v47, 0.0 }
 0x3f5   :  { %553 = vadd.xlane.f32.xlu1 %v552_v48 }
 0x3f8   :  { %v652_v49 = vpop.permute.xlu2 %651 }
 0x3f9   :  { %1908 = vmatmul.msk.bf16.vlgmr.msrb.gmra.mxu2 %vm437_vm7, %v652_v49 }
 0x3fb   :  { %v583_v50 = vpop.permute.xlu0 %582 }
 0x3fc   :  { %v588_v51 = vsel %vm437_vm7, %v583_v50, 0 }
 0x3fd   :  { %597 = vmatpush.bf16.xpose.msra.mxu3 %v588_v51 }
 0x403   :  { %v977_v52 = vpop.permute.xlu0 %976 }
 0x405   :  { %834 = vrot.lane.b32.xlu2 %v761_v29, %s2530_s2 }
 0x40b   :  { %v906_v53 = vpop.permute.xlu0 %905 }
 0x40c   :  { %v911_v0 = vsel %vm437_vm7, %v906_v53, 0  ;;  %v777_v8 = vpop.f32.mrf.mxu0 }
 0x40d   :  { %832 = vrot.lane.b32.xlu2 %v758_v56, %s2530_s2  ;;  %920 = vmatpush.bf16.xpose.msra.mxu0 %v911_v0  ;;  %v782_v16 = vmul.f32 0.17677669, %v777_v8 }
 0x40e   :  { %580 = vrot.lane.b32.xlu1 %v2609_v3, %s2527_s11  ;;  %v982_v3 = vsel %vm437_vm7, %v977_v52, 0 }
 0x40f   :  { %v2688_v42 = vadd.f32 %v782_v16, %v2615_v12 }
 0x411   :  { %v786_v24 = vsel %vm462_vm9, %v2688_v42, -inf }
 0x414   :  { %v779_v27 = vpop.f32.mrf.mxu0 }
 0x415   :  { %974 = vrot.lane.b32.xlu2 %v758_v56, %s2525_s8  ;;  %v783_v30 = vmul.f32 0.17677669, %v779_v27 }
 0x416   :  { %903 = vrot.lane.b32.xlu1 %v758_v56, %s2527_s11 }
 0x417   :  { %v2703_v35 = vadd.f32 %v783_v30, %v2619_v18 }
 0x419   :  { %v789_v40 = vsel %vm462_vm9, %v2703_v35, -inf }
 0x460   :  { %v551_v54 = vpop.xlane.xlu2 %550 }
 0x461   :  { %2296 = vrcp.f32 %v551_v54 }
 0x467   :  { %v2297_v59 = vpop.eup %2296 }
 0x468   :  { %v835_v55 = vpop.permute.xlu2 %834  ;;  %v554_v2 = vpop.xlane.xlu1 %553  ;;  %v557_v61 = vmul.f32 %v2297_v59, %v2293_v41 }
 0x469   :  { %v840_v57 = vsel %vm437_vm7, %v835_v55, 0  ;;  %2298 = vrcp.f32 %v554_v2 }
 0x46a   :  { %849 = vmatpush.bf16.xpose.msra.mxu2 %v840_v57 }
 0x46f   :  { %v2299_v60 = vpop.eup %2298 }
 0x470   :  { %v558_v62 = vmul.f32 %v2299_v60, %v2295_v47  ;;  %v833_v63 = vpop.permute.xlu2 %832 }
 0x471   :  { %1912 = vmatmul.msk.bf16.vlgmr.msra.gmra.mxu2 %vm437_vm7, %v833_v63 }
 0x472   :  { %991 = vmatpush.bf16.xpose.msrb.mxu2 %v982_v3  ;;  %v559_v4 = vpack.c.bf16 %v558_v62, %v557_v61 }
 0x474   :  { %1905 = vmatmul.msk.bf16.vlgmr.msrb.gmra.mxu3 %vm462_vm9, %v559_v4 }
 0x478   :  { %v975_v14 = vpop.permute.xlu2 %974 }
 0x47c   :  { %v670_v6 = vpop.f32.mrf.mxu2 }
 0x47d   :  { %v675_v7 = vmul.f32 0.17677669, %v670_v6 }
 0x47f   :  { %v677_v13 = vadd.f32 %v675_v7, %v2615_v12 }
 0x480   :  { %v581_v15 = vpop.permute.xlu1 %580 }
 0x481   :  { %1916 = vmatmul.msk.bf16.vlgmr.msrb.gmra.mxu2 %vm437_vm7, %v975_v14  ;;  %v679_v17 = vsel %vm462_vm9, %v677_v13, -inf }
 0x482   :  { %680 = vmax.xlane.f32.xlu2 %v679_v17 }
 0x484   :  { %1906 = vmatmul.msk.bf16.vlgmr.msra.gmra.mxu3 %vm437_vm7, %v581_v15  ;;  %v672_v19 = vpop.f32.mrf.mxu2 }
 0x485   :  { %v676_v20 = vmul.f32 0.17677669, %v672_v19 }
 0x487   :  { %v678_v21 = vadd.f32 %v676_v20, %v2619_v18 }
 0x488   :  { %v904_v22 = vpop.permute.xlu1 %903 }
 0x489   :  { %1914 = vmatmul.msk.bf16.vlgmr.msra.gmra.mxu0 %vm437_vm7, %v904_v22  ;;  %v682_v23 = vsel %vm462_vm9, %v678_v21, -inf  ;;  %v419_v22 = vpack.c.bf16 %v2680_v5, %v2680_v5 }
 0x48a   :  { %787 = vmax.xlane.f32.xlu2 %v786_v24  ;;  %683 = vmax.xlane.f32.xlu0 %v682_v23 }
 0x48b   :  { %v812_v23 = vunpack.c.l.b16 %v419_v22 }
 0x4f4   :  { %v851_v25 = vpop.f32.mrf.mxu2 }
 0x4f5   :  { %v856_v26 = vmul.f32 0.17677669, %v851_v25  ;;  %v681_v45 = vpop.xlane.xlu2 %680 }
 0x4f6   :  { %v685_v51 = vsub.f32 %v677_v13, %v681_v45 }
 0x4f7   :  { %v2695_v28 = vpop.f32.mrf.mxu3  ;;  %v2698_v29 = vadd.f32 %v856_v26, %v2615_v12 }
 0x4f8   :  { %v687_v54 = vmul.f32 1.442695, %v685_v51 }
 0x4f9   :  { %v860_v31 = vsel %vm462_vm9, %v2698_v29, -inf }
 0x4fa   :  { %861 = vmax.xlane.f32.xlu0 %v860_v31 }
 0x4fc   :  { %v853_v33 = vpop.f32.mrf.mxu2 }
 0x4fd   :  { %v857_v56 = vmul.f32 0.17677669, %v853_v33  ;;  %v684_v36 = vpop.xlane.xlu0 %683  ;;  %v788_v16 = vpop.xlane.xlu2 %787 }
 0x4fe   :  { %v686_v43 = vsub.f32 %v678_v21, %v684_v36  ;;  %v792_v17 = vsub.f32 %v2688_v42, %v788_v16  ;;  %v417_v21 = vpack.c.bf16 %v2676_v58, %v2676_v58 }
 0x4ff   :  { %v2705_v37 = vpop.f32.mrf.mxu3  ;;  %v2708_v38 = vadd.f32 %v857_v56, %v2619_v18 }
 0x500   :  { %v2244_v39 = vpack.i.bf16 %v2705_v37, %v2695_v28  ;;  %v689_v47 = vmul.f32 1.442695, %v686_v43  ;;  %v794_v19 = vmul.f32 1.442695, %v792_v17  ;;  %v811_v24 = vunpack.c.l.b16 %v417_v21 }
 0x501   :  { %v863_v41 = vsel %vm462_vm9, %v2708_v38, -inf }
 0x502   :  { %790 = vmax.xlane.f32.xlu0 %v789_v40  ;;  %864 = vmax.xlane.f32.xlu1 %v863_v41  ;;  %2300 = vpow2.f32 %v689_v47 }
 0x503   :  { %2302 = vpow2.f32 %v687_v54 }
 0x504   :  { %v993_v44 = vpop.f32.mrf.mxu2  ;;  %2304 = vpow2.f32 %v794_v19 }
 0x505   :  { %v998_v46 = vmul.f32 0.17677669, %v993_v44 }
 0x506   :  { %v922_v48 = vpop.f32.mrf.mxu0 }
 0x507   :  { %v927_v49 = vmul.f32 0.17677669, %v922_v48  ;;  %v2717_v50 = vadd.f32 %v998_v46, %v2615_v12  ;;  %v599_v61 = vpop.f32.mrf.mxu3 }
 0x508   :  { %v2729_v60 = vpop.eup %2300  ;;  %v604_v4 = vmul.f32 0.17677669, %v599_v61 }
 0x509   :  { %v1002_v52 = vsel %vm462_vm9, %v2717_v50, -inf  ;;  %v2722_v53 = vadd.f32 %v927_v49, %v2615_v12  ;;  %v694_v7 = vsel %vm462_vm9, %v2729_v60, 0.0  ;;  %v2740_v8 = vpop.eup %2302 }
 0x50a   :  { %1003 = vmax.xlane.f32.xlu1 %v1002_v52  ;;  %v606_v13 = vadd.f32 %v604_v4, %v2615_v12  ;;  %v691_v14 = vsel %vm462_vm9, %v2740_v8, 0.0  ;;  %v2751_v20 = vpop.eup %2304 }
 0x50b   :  { %v931_v0 = vsel %vm462_vm9, %v2722_v53, -inf  ;;  %v798_v12 = vsel %vm462_vm9, %v2751_v20, 0.0 }
 0x50c   :  { %v995_v55 = vpop.f32.mrf.mxu2  ;;  %932 = vmax.xlane.f32.xlu0 %v931_v0  ;;  %v608_v15 = vsel %vm462_vm9, %v606_v13, -inf }
 0x50d   :  { %v999_v2 = vmul.f32 0.17677669, %v995_v55 }
 0x50e   :  { %v924_v57 = vpop.f32.mrf.mxu0 }
 0x50f   :  { %v928_v3 = vmul.f32 0.17677669, %v924_v57  ;;  %v2727_v59 = vadd.f32 %v999_v2, %v2619_v18  ;;  %v601_v30 = vpop.f32.mrf.mxu3 }
 0x510   :  { %v605_v33 = vmul.f32 0.17677669, %v601_v30 }
 0x511   :  { %v1005_v62 = vsel %vm462_vm9, %v2727_v59, -inf  ;;  %v2734_v63 = vadd.f32 %v928_v3, %v2619_v18 }
 0x512   :  { %1006 = vmax.xlane.f32.xlu2 %v1005_v62  ;;  %v2770_v40 = vadd.f32 %v605_v33, %v2619_v18 }
 0x513   :  { %v934_v6 = vsel %vm462_vm9, %v2734_v63, -inf }
 0x514   :  { %935 = vmax.xlane.f32.xlu1 %v934_v6  ;;  %695 = vadd.xlane.f32.xlu0 %v694_v7  ;;  %v611_v43 = vsel %vm462_vm9, %v2770_v40, -inf }
 0x51a   :  { %692 = vadd.xlane.f32.xlu2 %v691_v14 }
 0x51c   :  { %609 = vmax.xlane.f32.xlu1 %v608_v15 }
 0x528   :  { %702 = vrot.lane.b32.xlu0 %v2607_v1, %s2525_s8 }
 0x535   :  { %631 = vrot.lane.b32.xlu1 %v2607_v1, %s2527_s11  ;;  %v2759_v1 = vpack.c.b16 %v812_v23, %v811_v24 }
 0x552   :  { %799 = vadd.xlane.f32.xlu0 %v798_v12 }
 0x566   :  { %954 = vrot.lane.b32.xlu0 %v2759_v1, %s2527_s11 }
 0x56d   :  { %v862_v42 = vpop.xlane.xlu0 %861 }
 0x56e   :  { %v866_v25 = vsub.f32 %v2698_v29, %v862_v42 }
 0x570   :  { %v868_v26 = vmul.f32 1.442695, %v866_v25 }
 0x572   :  { %2306 = vpow2.f32 %v868_v26 }
 0x575   :  { %v865_v27 = vpop.xlane.xlu1 %864  ;;  %v791_v36 = vpop.xlane.xlu0 %790 }
 0x576   :  { %v867_v58 = vsub.f32 %v2708_v38, %v865_v27  ;;  %v793_v29 = vsub.f32 %v2703_v35, %v791_v36 }
 0x578   :  { %v2764_v31 = vpop.eup %2306  ;;  %v870_v56 = vmul.f32 1.442695, %v867_v58  ;;  %v796_v44 = vmul.f32 1.442695, %v793_v29 }
 0x579   :  { %v872_v5 = vsel %vm462_vm9, %v2764_v31, 0.0 }
 0x57a   :  { %873 = vadd.xlane.f32.xlu2 %v872_v5  ;;  %2308 = vpow2.f32 %v870_v56 }
 0x57b   :  { %2310 = vpow2.f32 %v796_v44 }
 0x57d   :  { %v1004_v41 = vpop.xlane.xlu1 %1003 }
 0x57e   :  { %v1008_v48 = vsub.f32 %v2717_v50, %v1004_v41 }
 0x57f   :  { %v933_v38 = vpop.xlane.xlu0 %932 }
 0x580   :  { %v2775_v46 = vpop.eup %2308  ;;  %v1010_v49 = vmul.f32 1.442695, %v1008_v48  ;;  %v937_v54 = vsub.f32 %v2722_v53, %v933_v38 }
 0x581   :  { %v875_v18 = vsel %vm462_vm9, %v2775_v46, 0.0  ;;  %v2780_v35 = vpop.eup %2310 }
 0x582   :  { %612 = vmax.xlane.f32.xlu2 %v611_v43  ;;  %v801_v2 = vsel %vm462_vm9, %v2780_v35, 0.0  ;;  %v939_v57 = vmul.f32 1.442695, %v937_v54 }
 0x585   :  { %v1007_v45 = vpop.xlane.xlu2 %1006 }
 0x586   :  { %v1009_v21 = vsub.f32 %v2727_v59, %v1007_v45 }
 0x587   :  { %v936_v47 = vpop.xlane.xlu1 %935  ;;  %v696_v52 = vpop.xlane.xlu0 %695 }
 0x588   :  { %v938_v4 = vsub.f32 %v2734_v63, %v936_v47  ;;  %v1012_v22 = vmul.f32 1.442695, %v1009_v21  ;;  %v2199_v21 = vld [vmem:[#allocation7 + $0x18c] sm:$0xf] }
 0x58a   :  { %876 = vadd.xlane.f32.xlu2 %v875_v18  ;;  %v941_v16 = vmul.f32 1.442695, %v938_v4 }
 0x58d   :  { %v693_v51 = vpop.xlane.xlu2 %692 }
 0x58e   :  { %2312 = vrcp.f32 %v693_v51 }
 0x58f   :  { %v610_v0 = vpop.xlane.xlu1 %609  ;;  %2314 = vpow2.f32 %v1010_v49 }
 0x590   :  { %v614_v55 = vsub.f32 %v606_v13, %v610_v0  ;;  %2316 = vrcp.f32 %v696_v52 }
 0x592   :  { %v616_v50 = vmul.f32 1.442695, %v614_v55  ;;  %802 = vadd.xlane.f32.xlu2 %v801_v2 }
 0x594   :  { %2318 = vpow2.f32 %v616_v50  ;;  %v2313_v3 = vpop.eup %2312 }
 0x595   :  { %v2785_v61 = vpop.eup %2314  ;;  %2320 = vpow2.f32 %v939_v57  ;;  %v699_v6 = vmul.f32 %v2313_v3, %v2740_v8 }
 0x596   :  { %v2317_v62 = vpop.eup %2316  ;;  %v1014_v53 = vsel %vm462_vm9, %v2785_v61, 0.0  ;;  %2322 = vpow2.f32 %v941_v16 }
 0x597   :  { %v700_v13 = vmul.f32 %v2317_v62, %v2729_v60  ;;  %2324 = vpow2.f32 %v1012_v22 }
 0x599   :  { %v701_v17 = vpack.c.bf16 %v700_v13, %v699_v6 }
 0x59a   :  { %v2791_v7 = vpop.eup %2318  ;;  %1015 = vadd.xlane.f32.xlu2 %v1014_v53  ;;  %v703_v14 = vpop.permute.xlu0 %702 }
 0x59b   :  { %715 = vmatpush.bf16.msrb.mxu3 %v703_v14  ;;  %v620_v15 = vsel %vm462_vm9, %v2791_v7, 0.0  ;;  %v2796_v19 = vpop.eup %2320 }
 0x59c   :  { %621 = vadd.xlane.f32.xlu1 %v620_v15  ;;  %v943_v63 = vsel %vm462_vm9, %v2796_v19, 0.0  ;;  %v2801_v8 = vpop.eup %2322 }
 0x59d   :  { %v946_v12 = vsel %vm462_vm9, %v2801_v8, 0.0  ;;  %v2325_v24 = vpop.eup %2324 }
 0x59e   :  { %1909 = vmatmul.msk.bf16.vlgmr.msrb.gmra.mxu3 %vm462_vm9, %v701_v17  ;;  %v1017_v23 = vsel %vm462_vm9, %v2325_v24, 0.0 }
 0x5a2   :  { %944 = vadd.xlane.f32.xlu2 %v943_v63 }
 0x5a7   :  { %v632_v60 = vpop.permute.xlu1 %631 }
 0x5a8   :  { %644 = vmatpush.bf16.msrb.mxu1 %v632_v60 }
 0x5aa   :  { %947 = vadd.xlane.f32.xlu2 %v946_v12  ;;  %v1946_v12 = vld [vmem:[#allocation7 + $0x1e8] sm:$0xf0] }
 0x5ac   :  { %825 = vmatpush.bf16.msra.mxu1 %v2759_v1 }
 0x5b5   :  { %883 = vrot.lane.b32.xlu1 %v2759_v1, %s2530_s2 }
 0x5c5   :  { %v800_v48 = vpop.xlane.xlu0 %799 }
 0x5d8   :  { %v955_v57 = vpop.permute.xlu0 %954 }
 0x5df   :  { %1018 = vadd.xlane.f32.xlu1 %v1017_v23  ;;  %v1942_v23 = vld [vmem:[#allocation7 + $0x1a8] sm:$0xf0] }
 0x5ed   :  { %v874_v42 = vpop.xlane.xlu2 %873 }
 0x5f5   :  { %v613_v25 = vpop.xlane.xlu2 %612 }
 0x5f6   :  { %v615_v26 = vsub.f32 %v2770_v40, %v613_v25 }
 0x5f8   :  { %v618_v27 = vmul.f32 1.442695, %v615_v26  ;;  %2245 = vrot.lane.b32.xlu1 %v2244_v39, %s2525_s8 }
 0x5fa   :  { %2326 = vpow2.f32 %v618_v27 }
 0x5fd   :  { %v877_v58 = vpop.xlane.xlu2 %876 }
 0x5fe   :  { %2328 = vrcp.f32 %v877_v58 }
 0x5ff   :  { %2330 = vrcp.f32 %v874_v42  ;;  %v2191_v42 = vld [vmem:[#allocation7 + $0x14c] sm:$0xf] }
 0x600   :  { %v2327_v30 = vpop.eup %2326 }
 0x601   :  { %v623_v59 = vsel %vm462_vm9, %v2327_v30, 0.0 }
 0x602   :  { %624 = vadd.xlane.f32.xlu2 %v623_v59  ;;  %v1934_v59 = vld [vmem:[#allocation7 + $0x128] sm:$0xf0] }
 0x604   :  { %v2329_v56 = vpop.eup %2328 }
 0x605   :  { %v2331_v36 = vpop.eup %2330  ;;  %v881_v40 = vmul.f32 %v2329_v56, %v2775_v46  ;;  %v1930_v56 = vld [vmem:[#allocation7 + $0xe8] sm:$0xf0] }
 0x606   :  { %v880_v28 = vmul.f32 %v2331_v36, %v2764_v31 }
 0x608   :  { %v882_v39 = vpack.c.bf16 %v881_v40, %v880_v28 }
 0x60f   :  { %v622_v33 = vpop.xlane.xlu1 %621 }
 0x61a   :  { %1025 = vrot.lane.b32.xlu2 %v2759_v1, %s2525_s8  ;;  %v803_v1 = vpop.xlane.xlu2 %802 }
 0x621   :  { %v717_v5 = vpop.f32.mrf.mxu3 }
 0x622   :  { %v1016_v43 = vpop.xlane.xlu2 %1015 }
 0x627   :  { %v884_v37 = vpop.permute.xlu1 %883 }
 0x628   :  { %896 = vmatpush.bf16.msra.mxu3 %v884_v37  ;;  %v2167_v37 = vld [vmem:[#allocation7 + $0x8c] sm:$0xf] }
 0x629   :  { %v719_v41 = vpop.f32.mrf.mxu3 }
 0x62a   :  { %v2254_v29 = vpack.i.bf16 %v719_v41, %v717_v5  ;;  %v945_v44 = vpop.xlane.xlu2 %944  ;;  %v2175_v5 = vld [vmem:[#allocation7 + $0xcc] sm:$0xf] }
 0x62b   :  { %1913 = vmatmul.msk.bf16.vlgmr.msra.gmra.mxu3 %vm462_vm9, %v882_v39  ;;  %v1933_v28 = vor.u32 %v2175_v5, %v1930_v56  ;;  %v1926_v39 = vld [vmem:[#allocation7 + $0xa8] sm:$0xf0] }
 0x62c   :  { %2255 = vrot.lane.b32.xlu0 %v2254_v29, %s2530_s2  ;;  %v1929_v41 = vor.u32 %v2167_v37, %v1926_v39  ;;  %v2159_v29 = vld [vmem:[#allocation7 + $0x4c] sm:$0xf]  ;;  %v2066_v39 = vld [vmem:[#allocation7 + $0x1f0] sm:$0xf0] }
 0x632   :  { %v948_v38 = vpop.xlane.xlu2 %947 }
 0x652   :  { %v1019_v45 = vpop.xlane.xlu1 %1018 }
 0x653   :  { %2332 = vrcp.f32 %v1019_v45 }
 0x654   :  { %2334 = vrcp.f32 %v1016_v43 }
 0x655   :  { %2336 = vrcp.f32 %v622_v33 }
 0x659   :  { %v2333_v31 = vpop.eup %2332 }
 0x65a   :  { %v2335_v47 = vpop.eup %2334  ;;  %v1023_v49 = vmul.f32 %v2333_v31, %v2325_v24  ;;  %v1918_v31 = vld [vmem:[#allocation7 + $0x28] sm:$0xf0] }
 0x65b   :  { %v2337_v18 = vpop.eup %2336  ;;  %v1022_v52 = vmul.f32 %v2335_v47, %v2785_v61 }
 0x65c   :  { %v628_v0 = vmul.f32 %v2337_v18, %v2791_v7 }
 0x65d   :  { %v1024_v2 = vpack.c.bf16 %v1023_v49, %v1022_v52 }
 0x675   :  { %v625_v46 = vpop.xlane.xlu2 %624 }
 0x676   :  { %2338 = vrcp.f32 %v625_v46  ;;  %v2151_v46 = vld [vmem:[#allocation7 + $0xc] sm:$0xf] }
 0x677   :  { %2340 = vrcp.f32 %v803_v1  ;;  %v1922_v1 = vld [vmem:[#allocation7 + $0x68] sm:$0xf0]  ;;  %v1921_v47 = vor.u32 %v2151_v46, %v1918_v31  ;;  %v2200_v46 = vld [vmem:[#allocation7 + $0x194] sm:$0xf] }
 0x678   :  { %2342 = vrcp.f32 %v800_v48  ;;  %v2246_v48 = vpop.permute.xlu1 %2245 }
 0x679   :  { %2344 = vrcp.f32 %v948_v38  ;;  %v2248_v18 = vunpack.i.h.bf16 %v2246_v48  ;;  %v2247_v49 = vunpack.i.l.bf16 %v2246_v48  ;;  %v2056_v48 = vld [vmem:[#allocation7 + $0x198] sm:$0xf] }
 0x67a   :  { %2346 = vrcp.f32 %v945_v44  ;;  %v1925_v44 = vor.u32 %v2159_v29, %v1922_v1 }
 0x67c   :  { %v2339_v51 = vpop.eup %2338 }
 0x67d   :  { %v629_v54 = vmul.f32 %v2339_v51, %v2327_v30  ;;  %v1026_v55 = vpop.permute.xlu2 %1025  ;;  %v2341_v3 = vpop.eup %2340  ;;  %v2183_v30 = vld [vmem:[#allocation7 + $0x10c] sm:$0xf] }
 0x67e   :  { %1038 = vmatpush.bf16.msrb.mxu3 %v1026_v55  ;;  %v2343_v62 = vpop.eup %2342  ;;  %v807_v4 = vmul.f32 %v2341_v3, %v2780_v35  ;;  %v1937_v33 = vor.u32 %v2183_v30, %v1934_v59  ;;  %v747_v55 = vsel %vm437_vm7, %v2645_v10, %v2248_v18  ;;  %v2205_v18 = vld [vmem:[#allocation7 + $0x1b4] sm:$0xf0] }
 0x67f   :  { %v630_v50 = vpack.c.bf16 %v629_v54, %v628_v0  ;;  %v806_v61 = vmul.f32 %v2343_v62, %v2751_v20  ;;  %v2345_v53 = vpop.eup %2344  ;;  %v2207_v20 = vld [vmem:[#allocation7 + $0x1cc] sm:$0xf] }
 0x680   :  { %v2347_v7 = vpop.eup %2346  ;;  %v952_v13 = vmul.f32 %v2345_v53, %v2801_v8  ;;  %v1949_v24 = vor.u32 %v2207_v20, %v1946_v12  ;;  %v1945_v8 = vor.u32 %v2199_v21, %v1942_v23  ;;  %v2388_v23 = vld [vmem:[#allocation2] sm:$0xff] }
 0x681   :  { %1907 = vmatmul.msk.bf16.vlgmr.msrb.gmra.mxu1 %vm462_vm9, %v630_v50  ;;  %1917 = vmatmul.msk.bf16.vlgmr.msrb.gmra.mxu3 %vm462_vm9, %v1024_v2  ;;  %v808_v6 = vpack.c.bf16 %v807_v4, %v806_v61  ;;  %v951_v14 = vmul.f32 %v2347_v7, %v2796_v19  ;;  %v1938_v19 = vld [vmem:[#allocation7 + $0x168] sm:$0xf0]  ;;  %v746_v2 = vsel %vm437_vm7, %v2643_v9, %v2247_v49 }
 0x682   :  { %967 = vmatpush.bf16.msrb.mxu1 %v955_v57  ;;  %1109 = vmatpush.bf16.msrb.mxu0 %v1949_v24  ;;  %v1941_v27 = vor.u32 %v2191_v42, %v1938_v19 }
 0x683   :  { %v953_v15 = vpack.c.bf16 %v952_v13, %v951_v14 }
 0x686   :  { %1110 = vmatpush.bf16.msrb.mxu0 %v1945_v8 }
 0x68a   :  { %1111 = vmatpush.bf16.msrb.mxu0 %v1941_v27 }
 0x68e   :  { %1112 = vmatpush.bf16.msrb.mxu0 %v1937_v33 }
 0x691   :  { %1911 = vmatmul.msk.bf16.vlgmr.msra.gmra.mxu1 %vm462_vm9, %v808_v6 }
 0x692   :  { %1113 = vmatpush.bf16.msrb.mxu0 %v1933_v28  ;;  %v2208_v28 = vld [vmem:[#allocation7 + $0x1d4] sm:$0xf] }
 0x693   :  { %v2069_v29 = vor.u32 %v2208_v28, %v2066_v39  ;;  %v2172_v28 = vld [vmem:[#allocation7 + $0xac] sm:$0xf0] }
 0x695   :  { %1382 = vmatpush.bf16.msra.mxu2 %v2069_v29  ;;  %v2173_v29 = vld [vmem:[#allocation7 + $0xb4] sm:$0xf0] }
 0x696   :  { %1114 = vmatpush.bf16.msrb.mxu0 %v1929_v41  ;;  %v2072_v41 = vld [vmem:[#allocation7 + $0x1d8] sm:$0xf] }
 0x69a   :  { %1115 = vmatpush.bf16.msrb.mxu0 %v1925_v44  ;;  %v2074_v44 = vld [vmem:[#allocation7 + $0x1f8] sm:$0xf0] }
 0x69e   :  { %1116 = vmatpush.bf16.msrb.mxu0 %v1921_v47  ;;  %v2256_v51 = vpop.permute.xlu0 %2255  ;;  %v2050_v47 = vld [vmem:[#allocation7 + $0x1b0] sm:$0xf0] }
 0x69f   :  { %v2258_v50 = vunpack.i.h.bf16 %v2256_v51  ;;  %v2257_v57 = vunpack.i.l.bf16 %v2256_v51  ;;  %v2053_v49 = vor.u32 %v2200_v46, %v2050_v47  ;;  %v2057_v51 = vor.u32 %v2205_v18, %v2056_v48  ;;  %v2164_v46 = vld [vmem:[#allocation7 + $0x6c] sm:$0xf0]  ;;  %v1970_v48 = vld [vmem:[#allocation7 + $0x70] sm:$0xf0]  ;;  %v1976_v18 = vld [vmem:[#allocation7 + $0x58] sm:$0xf] }
 0x6a1   :  { %1915 = vmatmul.msk.bf16.vlgmr.msrb.gmra.mxu1 %vm462_vm9, %v953_v15  ;;  %1383 = vmatpush.bf16.msra.mxu2 %v2053_v49  ;;  %v2165_v49 = vld [vmem:[#allocation7 + $0x74] sm:$0xf0] }
 0x6ae   :  { %v898_v16 = vpop.f32.mrf.mxu3 }
 0x6b6   :  { %v900_v63 = vpop.f32.mrf.mxu3 }
 0x6b7   :  { %v2259_v26 = vpack.i.bf16 %v900_v63, %v898_v16 }
 0x6fe   :  { %v646_v17 = vpop.f32.mrf.mxu1 }
 0x704   :  { %v1040_v22 = vpop.f32.mrf.mxu3 }
 0x706   :  { %v648_v35 = vpop.f32.mrf.mxu1 }
 0x707   :  { %v2249_v60 = vpack.i.bf16 %v648_v35, %v646_v17 }
 0x709   :  { %2250 = vrot.lane.b32.xlu2 %v2249_v60, %s2527_s11 }
 0x70c   :  { %v1042_v58 = vpop.f32.mrf.mxu3 }
 0x70d   :  { %v2269_v40 = vpack.i.bf16 %v1042_v58, %v1040_v22 }
 0x70e   :  { %v827_v25 = vpop.f32.mrf.mxu1 }
 0x711   :  { %2260 = vrot.lane.b32.xlu2 %v2259_v26, %s2525_s8 }
 0x716   :  { %v829_v36 = vpop.f32.mrf.mxu1 }
 0x719   :  { %2270 = vrot.lane.b32.xlu2 %v2269_v40, %s2530_s2  ;;  %v2212_v40 = vld [vmem:[#allocation7 + $0x1ec] sm:$0xf0] }
 0x71e   :  { %v969_v43 = vpop.f32.mrf.mxu1 }
 0x726   :  { %v971_v38 = vpop.f32.mrf.mxu1 }
 0x727   :  { %v2264_v45 = vpack.i.bf16 %v971_v38, %v969_v43  ;;  %v2209_v43 = vld [vmem:[#allocation7 + $0x1dc] sm:$0xf] }
 0x728   :  { %v2077_v38 = vor.u32 %v2209_v43, %v2074_v44  ;;  %v2169_v44 = vld [vmem:[#allocation7 + $0x9c] sm:$0xf] }
 0x729   :  { %2265 = vrot.lane.b32.xlu0 %v2264_v45, %s2527_s11  ;;  %v2204_v45 = vld [vmem:[#allocation7 + $0x1ac] sm:$0xf0] }
 0x72a   :  { %1420 = vmatpush.bf16.msra.mxu0 %v2077_v38  ;;  %v1994_v38 = vld [vmem:[#allocation7 + $0xb8] sm:$0xf0] }
 0x763   :  { %v2251_v52 = vpop.permute.xlu2 %2250 }
 0x764   :  { %v2253_v0 = vunpack.i.h.bf16 %v2251_v52  ;;  %v2252_v54 = vunpack.i.l.bf16 %v2251_v52  ;;  %v2201_v52 = vld [vmem:[#allocation7 + $0x19c] sm:$0xf] }
 0x766   :  { %v750_v3 = vsel %vm748_vm1, %v747_v55, %v2253_v0  ;;  %v749_v62 = vsel %vm748_vm1, %v746_v2, %v2252_v54  ;;  %v2058_v0 = vld [vmem:[#allocation7 + $0x1b8] sm:$0xf0]  ;;  %v2032_v55 = vld [vmem:[#allocation7 + $0x150] sm:$0xf] }
 0x767   :  { %v752_v4 = vsel %vm751_vm2, %v749_v62, %v2257_v57  ;;  %v753_v61 = vsel %vm751_vm2, %v750_v3, %v2258_v50  ;;  %v2061_v54 = vor.u32 %v2201_v52, %v2058_v0  ;;  %v2196_v2 = vld [vmem:[#allocation7 + $0x16c] sm:$0xf0]  ;;  %v2192_v50 = vld [vmem:[#allocation7 + $0x154] sm:$0xf]  ;;  %v2040_v62 = vld [vmem:[#allocation7 + $0x158] sm:$0xf]  ;;  %v1977_v52 = vor.u32 %v2165_v49, %v1976_v18 }
 0x768   :  { %v1075_v6 = vpack.c.bf16 %v753_v61, %v752_v4  ;;  %v2033_v57 = vor.u32 %v2196_v2, %v2032_v55  ;;  %v2034_v3 = vld [vmem:[#allocation7 + $0x170] sm:$0xf0]  ;;  %v2197_v4 = vld [vmem:[#allocation7 + $0x174] sm:$0xf0]  ;;  %v2161_v0 = vld [vmem:[#allocation7 + $0x5c] sm:$0xf] }
 0x769   :  { %1421 = vmatpush.bf16.msra.mxu0 %v2061_v54  ;;  %v2037_v61 = vor.u32 %v2192_v50, %v2034_v3  ;;  %v1978_v54 = vld [vmem:[#allocation7 + $0x78] sm:$0xf0]  ;;  %v1952_v2 = vld [vmem:[#allocation7 + $0x10] sm:$0xf] }
 0x76a   :  { %1117 = vmatmul.bf16.vlgmr.msrb.gmra.mxu0 %v1075_v6  ;;  %v2041_v6 = vor.u32 %v2197_v4, %v2040_v62  ;;  %v1981_v55 = vor.u32 %v2161_v0, %v1978_v54  ;;  %v2156_v50 = vld [vmem:[#allocation7 + $0x2c] sm:$0xf0]  ;;  %v1954_v4 = vld [vmem:[#allocation7 + $0x30] sm:$0xf0] }
 0x76b   :  { %v2261_v53 = vpop.permute.xlu2 %2260  ;;  %1384 = vmatpush.bf16.msra.mxu2 %v2037_v61  ;;  %v1953_v62 = vor.u32 %v2156_v50, %v1952_v2  ;;  %v1960_v61 = vld [vmem:[#allocation7 + $0x18] sm:$0xf] }
 0x76c   :  { %v2263_v7 = vunpack.i.h.bf16 %v2261_v53  ;;  %v2262_v13 = vunpack.i.l.bf16 %v2261_v53  ;;  %v2193_v53 = vld [vmem:[#allocation7 + $0x15c] sm:$0xf] }
 0x76e   :  { %v1069_v9 = vsel %vm437_vm7, %v827_v25, %v2262_v13  ;;  %v1070_v17 = vsel %vm437_vm7, %v829_v36, %v2263_v7  ;;  %v2389_v25 = vld [vmem:[#allocation2 + $0x8] sm:$0xff]  ;;  %v2064_v36 = vld [vmem:[#allocation7 + $0x1d0] sm:$0xf]  ;;  %v2042_v7 = vld [vmem:[#allocation7 + $0x178] sm:$0xf0] }
 0x76f   :  { %v2065_v37 = vor.u32 %v2212_v40, %v2064_v36  ;;  %v2045_v13 = vor.u32 %v2193_v53, %v2042_v7  ;;  %v1984_v40 = vld [vmem:[#allocation7 + $0x90] sm:$0xf] }
 0x770   :  { %v1985_v39 = vor.u32 %v2172_v28, %v1984_v40 }
 0x771   :  { %1363 = vmatpush.bf16.msra.mxu1 %v2065_v37  ;;  %1422 = vmatpush.bf16.msra.mxu0 %v2045_v13  ;;  %v2168_v37 = vld [vmem:[#allocation7 + $0x94] sm:$0xf] }
 0x773   :  { %v2271_v14 = vpop.permute.xlu2 %2270 }
 0x774   :  { %v2273_v63 = vunpack.i.h.bf16 %v2271_v14  ;;  %v2272_v35 = vunpack.i.l.bf16 %v2271_v14  ;;  %v2016_v14 = vld [vmem:[#allocation7 + $0x110] sm:$0xf] }
 0x79b   :  { %v2266_v10 = vpop.permute.xlu0 %2265 }
 0x79c   :  { %v2268_v15 = vunpack.i.h.bf16 %v2266_v10  ;;  %v2267_v16 = vunpack.i.l.bf16 %v2266_v10  ;;  %v2188_v10 = vld [vmem:[#allocation7 + $0x12c] sm:$0xf0] }
 0x79e   :  { %v1071_v60 = vsel %vm748_vm1, %v1069_v9, %v2267_v16  ;;  %v1072_v20 = vsel %vm748_vm1, %v1070_v17, %v2268_v15  ;;  %v2184_v15 = vld [vmem:[#allocation7 + $0x114] sm:$0xf]  ;;  %v2017_v16 = vor.u32 %v2188_v10, %v2016_v14  ;;  %v2024_v17 = vld [vmem:[#allocation7 + $0x118] sm:$0xf]  ;;  %v2153_v14 = vld [vmem:[#allocation7 + $0x1c] sm:$0xf] }
 0x79f   :  { %v1073_v12 = vsel %vm751_vm2, %v1071_v60, %v2272_v35  ;;  %v1074_v21 = vsel %vm751_vm2, %v1072_v20, %v2273_v63  ;;  %v2018_v9 = vld [vmem:[#allocation7 + $0x130] sm:$0xf0]  ;;  %v2189_v63 = vld [vmem:[#allocation7 + $0x134] sm:$0xf0]  ;;  %v2185_v20 = vld [vmem:[#allocation7 + $0x11c] sm:$0xf] }
 0x7a0   :  { %v1076_v22 = vpack.c.bf16 %v1074_v21, %v1073_v12  ;;  %v2021_v35 = vor.u32 %v2184_v15, %v2018_v9  ;;  %v2025_v60 = vor.u32 %v2189_v63, %v2024_v17  ;;  %v2026_v12 = vld [vmem:[#allocation7 + $0x138] sm:$0xf0] }
 0x7a1   :  { %v2029_v21 = vor.u32 %v2185_v20, %v2026_v12  ;;  %v1962_v10 = vld [vmem:[#allocation7 + $0x38] sm:$0xf0] }
 0x7a2   :  { %1122 = vmatmul.bf16.gmra.mxu0 %v1076_v22  ;;  %1385 = vmatpush.bf16.msra.mxu2 %v2021_v35  ;;  %v2000_v22 = vld [vmem:[#allocation7 + $0xd0] sm:$0xf]  ;;  %v1965_v15 = vor.u32 %v2153_v14, %v1962_v10  ;;  %v2217_v14 = vld [vmem:[#allocation8 + $0x18] sm:$0xff]  ;;  %v2226_v10 = vld [vmem:[#allocation8 + $0x60] sm:$0xff] }
 0x7a3   :  { %1423 = vmatpush.bf16.msra.mxu0 %v2029_v21 }
 0x7e7   :  { %v1118_v24 = vpop.f32.mrf.mxu0 }
 0x7e8   :  { %v2850_v8 = vadd.f32 %v2388_v23, %v1118_v24  ;;  %v2180_v24 = vld [vmem:[#allocation7 + $0xec] sm:$0xf0]  ;;  %v2176_v23 = vld [vmem:[#allocation7 + $0xd4] sm:$0xf] }
 0x7ea   :  { %v1132_v42 = vmul.f32 %v2850_v8, %v2850_v8 }
 0x7ec   :  { %1136 = vadd.xlane.f32.xlu0 %v1132_v42  ;;  %v2001_v42 = vor.u32 %v2180_v24, %v2000_v22 }
 0x7ef   :  { %v1120_v19 = vpop.f32.mrf.mxu0 }
 0x7f0   :  { %v2854_v26 = vadd.f32 %v2389_v25, %v1120_v19  ;;  %v2002_v19 = vld [vmem:[#allocation7 + $0xf0] sm:$0xf0]  ;;  %v2008_v25 = vld [vmem:[#allocation7 + $0xd8] sm:$0xf] }
 0x7f2   :  { %v1133_v27 = vmul.f32 %v2854_v26, %v2854_v26 }
 0x7f4   :  { %1138 = vadd.xlane.f32.xlu2 %v1133_v27  ;;  %v2181_v27 = vld [vmem:[#allocation7 + $0xf4] sm:$0xf0] }
 0x81f   :  { %v1123_v30 = vpop.f32.mrf.mxu0 }
 0x820   :  { %v2859_v59 = vadd.f32 %v1123_v30, %v2627_v32  ;;  %v2213_v32 = vld [vmem:[#allocation7 + $0x1f4] sm:$0xf0]  ;;  %v2005_v30 = vor.u32 %v2176_v23, %v2002_v19 }
 0x821   :  { %v2073_v1 = vor.u32 %v2213_v32, %v2072_v41  ;;  %v1986_v41 = vld [vmem:[#allocation7 + $0xb0] sm:$0xf0]  ;;  %v1992_v32 = vld [vmem:[#allocation7 + $0x98] sm:$0xf] }
 0x822   :  { %v1134_v58 = vmul.f32 %v2859_v59, %v2859_v59  ;;  %1386 = vmatpush.bf16.msra.mxu2 %v2005_v30  ;;  %v1993_v43 = vor.u32 %v2173_v29, %v1992_v32 }
 0x823   :  { %1401 = vmatpush.bf16.msra.mxu3 %v2073_v1  ;;  %v1989_v1 = vor.u32 %v2168_v37, %v1986_v41 }
 0x824   :  { %1140 = vadd.xlane.f32.xlu1 %v1134_v58  ;;  %v2009_v58 = vor.u32 %v2181_v27, %v2008_v25 }
 0x826   :  { %1387 = vmatpush.bf16.msra.mxu2 %v1989_v1 }
 0x827   :  { %v1125_v33 = vpop.f32.mrf.mxu0  ;;  %1402 = vmatpush.bf16.msra.mxu3 %v2057_v51 }
 0x828   :  { %v2864_v5 = vadd.f32 %v1125_v33, %v2631_v34  ;;  %v2048_v34 = vld [vmem:[#allocation7 + $0x190] sm:$0xf]  ;;  %v2177_v33 = vld [vmem:[#allocation7 + $0xdc] sm:$0xf] }
 0x829   :  { %v2049_v31 = vor.u32 %v2204_v45, %v2048_v34  ;;  %v1997_v34 = vor.u32 %v2169_v44, %v1994_v38  ;;  %v1968_v45 = vld [vmem:[#allocation7 + $0x50] sm:$0xf] }
 0x82a   :  { %v1135_v56 = vmul.f32 %v2864_v5, %v2864_v5  ;;  %v1969_v47 = vor.u32 %v2164_v46, %v1968_v45 }
 0x82b   :  { %1364 = vmatpush.bf16.msra.mxu1 %v2049_v31  ;;  %1403 = vmatpush.bf16.msra.mxu3 %v2041_v6  ;;  %v2160_v31 = vld [vmem:[#allocation7 + $0x54] sm:$0xf]  ;;  %v2157_v6 = vld [vmem:[#allocation7 + $0x34] sm:$0xf0] }
 0x82c   :  { %1142 = vadd.xlane.f32.xlu0 %v1135_v56  ;;  %v2010_v56 = vld [vmem:[#allocation7 + $0xf8] sm:$0xf0]  ;;  %v1973_v51 = vor.u32 %v2160_v31, %v1970_v48  ;;  %v1961_v13 = vor.u32 %v2157_v6, %v1960_v61  ;;  %v2219_v6 = vld [vmem:[#allocation8 + $0x28] sm:$0xff] }
 0x82d   :  { %v2013_v36 = vor.u32 %v2177_v33, %v2010_v56  ;;  %v2229_v61 = vld [vmem:[#allocation8 + $0x78] sm:$0xff] }
 0x82e   :  { %1388 = vmatpush.bf16.msra.mxu2 %v1973_v51 }
 0x82f   :  { %1365 = vmatpush.bf16.msra.mxu1 %v2033_v57  ;;  %1404 = vmatpush.bf16.msra.mxu3 %v2025_v60  ;;  %v2152_v57 = vld [vmem:[#allocation7 + $0x14] sm:$0xf] }
 0x830   :  { %1424 = vmatpush.bf16.msra.mxu0 %v2013_v36  ;;  %v1957_v7 = vor.u32 %v2152_v57, %v1954_v4  ;;  %v2220_v4 = vld [vmem:[#allocation8 + $0x30] sm:$0xff] }
 0x832   :  { %1389 = vmatpush.bf16.msra.mxu2 %v1957_v7  ;;  %v2218_v7 = vld [vmem:[#allocation8 + $0x20] sm:$0xff] }
 0x833   :  { %1366 = vmatpush.bf16.msra.mxu1 %v2017_v16  ;;  %1405 = vmatpush.bf16.msra.mxu3 %v2009_v58  ;;  %v2390_v58 = vld [vmem:[#allocation5] sm:$0x3] }
 0x834   :  { %1425 = vmatpush.bf16.msra.mxu0 %v1997_v34  ;;  %v1196_v33 = vperm.slane %v2390_v58, 1 }
 0x836   :  { %1758 = vmatpush.bf16.msrb.mxu2 %v2229_v61 }
 0x837   :  { %1367 = vmatpush.bf16.msra.mxu1 %v2001_v42  ;;  %1406 = vmatpush.bf16.msra.mxu3 %v1993_v43 }
 0x838   :  { %1426 = vmatpush.bf16.msra.mxu0 %v1981_v55 }
 0x83b   :  { %1368 = vmatpush.bf16.msra.mxu1 %v1985_v39  ;;  %1407 = vmatpush.bf16.msra.mxu3 %v1977_v52 }
 0x83c   :  { %1427 = vmatpush.bf16.msra.mxu0 %v1965_v15 }
 0x83f   :  { %1369 = vmatpush.bf16.msra.mxu1 %v1969_v47  ;;  %1408 = vmatpush.bf16.msra.mxu3 %v1961_v13  ;;  %v2227_v13 = vld [vmem:[#allocation8 + $0x68] sm:$0xff] }
 0x843   :  { %1370 = vmatpush.bf16.msra.mxu1 %v1953_v62  ;;  %v2221_v62 = vld [vmem:[#allocation8 + $0x38] sm:$0xff] }
 0x847   :  { %1739 = vmatpush.bf16.msrb.mxu1 %v2221_v62 }
 0x84b   :  { %1740 = vmatpush.bf16.msrb.mxu1 %v2220_v4 }
 0x84f   :  { %1741 = vmatpush.bf16.msrb.mxu1 %v2219_v6 }
 0x853   :  { %1742 = vmatpush.bf16.msrb.mxu1 %v2218_v7 }
 0x857   :  { %1743 = vmatpush.bf16.msrb.mxu1 %v2217_v14 }
 0x85f   :  { %v1137_v3 = vpop.xlane.xlu0 %1136 }
 0x860   :  { %v1144_v53 = vmul.f32 %v1137_v3, %v2591_v11 }
 0x862   :  { %v1148_v16 = vadd.f32 1e-06, %v1144_v53  ;;  %v2228_v53 = vld [vmem:[#allocation8 + $0x70] sm:$0xff] }
 0x863   :  { %1759 = vmatpush.bf16.msrb.mxu2 %v2228_v53 }
 0x864   :  { %2348 = vrsqrt.f32 %v1148_v16  ;;  %vm1158_vm4 = vweird.f32 %v1148_v16 }
 0x867   :  { %v1139_v9 = vpop.xlane.xlu2 %1138  ;;  %1760 = vmatpush.bf16.msrb.mxu2 %v2227_v13 }
 0x868   :  { %v1145_v17 = vmul.f32 %v1139_v9, %v2591_v11 }
 0x86a   :  { %v2349_v63 = vpop.eup %2348  ;;  %v1149_v35 = vadd.f32 1e-06, %v1145_v17  ;;  %v2225_v17 = vld [vmem:[#allocation8 + $0x58] sm:$0xff] }
 0x86b   :  { %v1153_v60 = vmul.f32 %v2349_v63, %v1148_v16  ;;  %vm1159_vm3 = vweird.f32 %v2349_v63  ;;  %1761 = vmatpush.bf16.msrb.mxu2 %v2226_v10  ;;  %v2216_v16 = vld [vmem:[#allocation8 + $0x10] sm:$0xff] }
 0x86c   :  { %2350 = vrsqrt.f32 %v1149_v35  ;;  %vm1160_vm5 = vmor %vm1158_vm4, %vm1159_vm3  ;;  %vm1168_vm7 = vweird.f32 %v1149_v35  ;;  %1744 = vmatpush.bf16.msrb.mxu1 %v2216_v16 }
 0x86d   :  { %v1154_v20 = vmul.f32 %v2349_v63, %v1153_v60  ;;  %v2224_v60 = vld [vmem:[#allocation8 + $0x50] sm:$0xff] }
 0x86f   :  { %v1155_v12 = vmul.f32 0.5, %v1154_v20  ;;  %1762 = vmatpush.bf16.msrb.mxu2 %v2225_v17 }
 0x871   :  { %v1156_v21 = vsub.f32 1.5, %v1155_v12 }
 0x872   :  { %v2351_v22 = vpop.eup %2350 }
 0x873   :  { %v1163_v24 = vmul.f32 %v2351_v22, %v1149_v35  ;;  %v1157_v23 = vmul.f32 %v2349_v63, %v1156_v21  ;;  %vm1169_vm6 = vweird.f32 %v2351_v22  ;;  %1763 = vmatpush.bf16.msrb.mxu2 %v2224_v60  ;;  %v2214_v21 = vld [vmem:[#allocation8] sm:$0xff] }
 0x874   :  { %vm1170_vm8 = vmor %vm1168_vm7, %vm1169_vm6 }
 0x875   :  { %v1164_v42 = vmul.f32 %v2351_v22, %v1163_v24  ;;  %v1161_v25 = vsel %vm1160_vm5, %v2349_v63, %v1157_v23  ;;  %v2215_v63 = vld [vmem:[#allocation8 + $0x8] sm:$0xff] }
 0x876   :  { %v1192_v56 = vmul.f32 %v1161_v25, %v2850_v8  ;;  %1745 = vmatpush.bf16.msrb.mxu1 %v2215_v63  ;;  %v2222_v25 = vld [vmem:[#allocation8 + $0x40] sm:$0xff] }
 0x877   :  { %v1165_v19 = vmul.f32 0.5, %v1164_v42  ;;  %v2223_v42 = vld [vmem:[#allocation8 + $0x48] sm:$0xff] }
 0x878   :  { %v1197_v28 = vmul.f32 %v1196_v33, %v1192_v56  ;;  %1764 = vmatpush.bf16.msrb.mxu2 %v2223_v42 }
 0x879   :  { %v1166_v27 = vsub.f32 1.5, %v1165_v19 }
 0x87a   :  { %1746 = vmatpush.bf16.msrb.mxu1 %v2214_v21 }
 0x87b   :  { %v1167_v30 = vmul.f32 %v2351_v22, %v1166_v27 }
 0x87c   :  { %1765 = vmatpush.bf16.msrb.mxu2 %v2222_v25 }
 0x87d   :  { %v1171_v36 = vsel %vm1170_vm8, %v2351_v22, %v1167_v30 }
 0x87e   :  { %v1193_v40 = vmul.f32 %v1171_v36, %v2854_v26 }
 0x880   :  { %v1198_v37 = vmul.f32 %v1196_v33, %v1193_v40 }
 0x882   :  { %v1201_v39 = vpack.c.bf16 %v1198_v37, %v1197_v28 }
 0x884   :  { %1371 = vmatmul.bf16.vlgmr.msra.gmra.mxu1 %v1201_v39  ;;  %1390 = vmatmul.bf16.vlgmr.msra.gmra.mxu2 %v1201_v39 }
 0x885   :  { %1409 = vmatmul.bf16.vlgmr.msra.gmra.mxu3 %v1201_v39  ;;  %1428 = vmatmul.bf16.vlgmr.msra.gmra.mxu0 %v1201_v39 }
 0x897   :  { %v1141_v41 = vpop.xlane.xlu1 %1140 }
 0x898   :  { %v1146_v32 = vmul.f32 %v1141_v41, %v2591_v11 }
 0x89a   :  { %v1150_v29 = vadd.f32 1e-06, %v1146_v32 }
 0x89c   :  { %2352 = vrsqrt.f32 %v1150_v29  ;;  %vm1178_vm10 = vweird.f32 %v1150_v29 }
 0x89f   :  { %v1143_v1 = vpop.xlane.xlu0 %1142 }
 0x8a0   :  { %v1147_v43 = vmul.f32 %v1143_v1, %v2591_v11 }
 0x8a2   :  { %v2353_v44 = vpop.eup %2352  ;;  %v1151_v38 = vadd.f32 1e-06, %v1147_v43 }
 0x8a3   :  { %v1173_v34 = vmul.f32 %v2353_v44, %v1150_v29  ;;  %vm1179_vm9 = vweird.f32 %v2353_v44 }
 0x8a4   :  { %2354 = vrsqrt.f32 %v1151_v38  ;;  %vm1180_vm11 = vmor %vm1178_vm10, %vm1179_vm9  ;;  %vm1188_vm13 = vweird.f32 %v1151_v38 }
 0x8a5   :  { %v1174_v45 = vmul.f32 %v2353_v44, %v1173_v34 }
 0x8a7   :  { %v1175_v46 = vmul.f32 0.5, %v1174_v45 }
 0x8a9   :  { %v1176_v31 = vsub.f32 1.5, %v1175_v46 }
 0x8aa   :  { %v2355_v47 = vpop.eup %2354 }
 0x8ab   :  { %v1183_v48 = vmul.f32 %v2355_v47, %v1151_v38  ;;  %v1177_v18 = vmul.f32 %v2353_v44, %v1176_v31  ;;  %vm1189_vm12 = vweird.f32 %v2355_v47 }
 0x8ac   :  { %vm1190_vm14 = vmor %vm1188_vm13, %vm1189_vm12 }
 0x8ad   :  { %v1184_v49 = vmul.f32 %v2355_v47, %v1183_v48  ;;  %v1181_v52 = vsel %vm1180_vm11, %v2353_v44, %v1177_v18 }
 0x8ae   :  { %v1194_v11 = vmul.f32 %v1181_v52, %v2859_v59 }
 0x8af   :  { %v1185_v51 = vmul.f32 0.5, %v1184_v49 }
 0x8b0   :  { %v1199_v50 = vmul.f32 %v1196_v33, %v1194_v11 }
 0x8b1   :  { %v1186_v0 = vsub.f32 1.5, %v1185_v51 }
 0x8b3   :  { %v1187_v54 = vmul.f32 %v2355_v47, %v1186_v0 }
 0x8b5   :  { %v1191_v55 = vsel %vm1190_vm14, %v2355_v47, %v1187_v54 }
 0x8b6   :  { %v1195_v2 = vmul.f32 %v1191_v55, %v2864_v5 }
 0x8b8   :  { %v1200_v57 = vmul.f32 %v1196_v33, %v1195_v2 }
 0x8ba   :  { %v1202_v3 = vpack.c.bf16 %v1200_v57, %v1199_v50 }
 0x8bc   :  { %1376 = vmatmul.bf16.gmra.mxu1 %v1202_v3  ;;  %1395 = vmatmul.bf16.gmra.mxu2 %v1202_v3 }
 0x8bd   :  { %1414 = vmatmul.bf16.gmra.mxu3 %v1202_v3  ;;  %1433 = vmatmul.bf16.gmra.mxu0 %v1202_v3 }
 0x901   :  { %v2876_v15 = vpop.f32.mrf.mxu1 }
 0x902   :  { %v2078_v9 = vmul.f32 -1.442695, %v2876_v15  ;;  %v1429_v3 = vpop.f32.mrf.mxu0 }
 0x904   :  { %2356 = vpow2.f32 %v2078_v9 }
 0x907   :  { %v2879_v35 = vpop.f32.mrf.mxu2 }
 0x908   :  { %v2079_v20 = vmul.f32 -1.442695, %v2879_v35  ;;  %v1410_v47 = vpop.f32.mrf.mxu3 }
 0x909   :  { %v2882_v12 = vpop.f32.mrf.mxu1 }
 0x90a   :  { %v2357_v22 = vpop.eup %2356  ;;  %2358 = vpow2.f32 %v2079_v20  ;;  %v2080_v24 = vmul.f32 -1.442695, %v2882_v12 }
 0x90b   :  { %v1463_v23 = vadd.f32 1.0, %v2357_v22 }
 0x90c   :  { %2360 = vpow2.f32 %v2080_v24 }
 0x90d   :  { %2362 = vrcp.f32 %v1463_v23  ;;  %v1482_v43 = vand.u32 2147483648, %v1463_v23  ;;  %vm1476_vm0 = vweird.f32 %v1463_v23  ;;  %v1480_v34 = vand.u32 2147483647, %v1463_v23 }
 0x90f   :  { %v2885_v19 = vpop.f32.mrf.mxu2  ;;  %v1483_v18 = vor.u32 1.1754944e-38, %v1482_v43  ;;  %vm1481_vm3 = vcmp.eq.f32.partialorder %v1480_v34, 8.507059e+37 }
 0x910   :  { %v2359_v27 = vpop.eup %2358  ;;  %v2081_v30 = vmul.f32 -1.442695, %v2885_v19  ;;  %v1412_v22 = vpop.f32.mrf.mxu3 }
 0x911   :  { %v1464_v58 = vadd.f32 1.0, %v2359_v27 }
 0x912   :  { %v2361_v33 = vpop.eup %2360  ;;  %2364 = vpow2.f32 %v2081_v30 }
 0x913   :  { %v2363_v56 = vpop.eup %2362  ;;  %2366 = vrcp.f32 %v1464_v58  ;;  %v1465_v40 = vadd.f32 1.0, %v2361_v33  ;;  %v1495_v49 = vand.u32 2147483647, %v1464_v58  ;;  %v1497_v0 = vand.u32 2147483648, %v1464_v58  ;;  %v1431_v33 = vpop.f32.mrf.mxu0 }
 0x914   :  { %v1472_v36 = vmul.f32 %v2363_v56, %v1463_v23  ;;  %vm1477_vm15 = vweird.f32 %v2363_v56  ;;  %vm1491_vm5 = vweird.f32 %v1464_v58 }
 0x915   :  { %2368 = vrcp.f32 %v1465_v40  ;;  %vm2888_vm1 = vmor %vm1476_vm0, %vm1477_vm15  ;;  %v1512_v54 = vand.u32 2147483648, %v1465_v40  ;;  %v1510_v2 = vand.u32 2147483647, %v1465_v40  ;;  %vm2898_vm7 = vcmp.eq.f32.partialorder %v1495_v49, 8.507059e+37 }
 0x916   :  { %v1473_v28 = vsub.f32 1.0, %v1472_v36  ;;  %vm1506_vm8 = vweird.f32 %v1465_v40  ;;  %v1498_v53 = vor.u32 1.1754944e-38, %v1497_v0 }
 0x917   :  { %v1513_v7 = vor.u32 1.1754944e-38, %v1512_v54  ;;  %vm1511_vm10 = vcmp.eq.f32.partialorder %v1510_v2, 8.507059e+37 }
 0x918   :  { %v2365_v37 = vpop.eup %2364  ;;  %v1474_v39 = vmul.f32 %v2363_v56, %v1473_v28 }
 0x919   :  { %v2367_v41 = vpop.eup %2366  ;;  %v1466_v32 = vadd.f32 1.0, %v2365_v37 }
 0x91a   :  { %v1487_v29 = vmul.f32 %v2367_v41, %v1464_v58  ;;  %v1475_v1 = vadd.f32 %v2363_v56, %v1474_v39  ;;  %vm1492_vm2 = vweird.f32 %v2367_v41 }
 0x91b   :  { %2370 = vrcp.f32 %v1466_v32  ;;  %v2369_v44 = vpop.eup %2368  ;;  %vm2894_vm6 = vmor %vm1491_vm5, %vm1492_vm2  ;;  %v1527_v16 = vand.u32 2147483648, %v1466_v32  ;;  %v1525_v63 = vand.u32 2147483647, %v1466_v32  ;;  %vm1521_vm12 = vweird.f32 %v1466_v32 }
 0x91c   :  { %v1488_v38 = vsub.f32 1.0, %v1487_v29  ;;  %v1502_v45 = vmul.f32 %v2369_v44, %v1465_v40  ;;  %v1479_v48 = vsel %vm2888_vm1, %v2363_v56, %v1475_v1  ;;  %vm1507_vm4 = vweird.f32 %v2369_v44 }
 0x91d   :  { %v1484_v50 = vsel %vm1481_vm3, %v1483_v18, %v1479_v48  ;;  %vm1508_vm9 = vmor %vm1506_vm8, %vm1507_vm4  ;;  %v1528_v23 = vor.u32 1.1754944e-38, %v1527_v16  ;;  %vm1526_vm14 = vcmp.eq.f32.partialorder %v1525_v63, 8.507059e+37 }
 0x91e   :  { %v1489_v31 = vmul.f32 %v2367_v41, %v1488_v38  ;;  %v1503_v51 = vsub.f32 1.0, %v1502_v45  ;;  %v1591_v14 = vmul.f32 %v1484_v50, %v2876_v15 }
 0x920   :  { %v1490_v52 = vadd.f32 %v2367_v41, %v1489_v31  ;;  %v1504_v55 = vmul.f32 %v2369_v44, %v1503_v51  ;;  %v1599_v24 = vmul.f32 %v1591_v14, %v1410_v47 }
 0x921   :  { %v2371_v11 = vpop.eup %2370 }
 0x922   :  { %v1517_v57 = vmul.f32 %v2371_v11, %v1466_v32  ;;  %v1505_v61 = vadd.f32 %v2369_v44, %v1504_v55  ;;  %v1494_v6 = vsel %vm2894_vm6, %v2367_v41, %v1490_v52  ;;  %vm1522_vm11 = vweird.f32 %v2371_v11 }
 0x923   :  { %v1499_v60 = vsel %vm2898_vm7, %v1498_v53, %v1494_v6  ;;  %vm1523_vm13 = vmor %vm1521_vm12, %vm1522_vm11 }
 0x924   :  { %v1518_v13 = vsub.f32 1.0, %v1517_v57  ;;  %v1509_v10 = vsel %vm1508_vm9, %v2369_v44, %v1505_v61  ;;  %v1592_v15 = vmul.f32 %v1499_v60, %v2879_v35 }
 0x925   :  { %v1514_v9 = vsel %vm1511_vm10, %v1513_v7, %v1509_v10 }
 0x926   :  { %v1519_v17 = vmul.f32 %v2371_v11, %v1518_v13  ;;  %v1593_v20 = vmul.f32 %v1514_v9, %v2882_v12  ;;  %v1600_v56 = vmul.f32 %v1592_v15, %v1429_v3 }
 0x928   :  { %v1520_v21 = vadd.f32 %v2371_v11, %v1519_v17  ;;  %v1601_v42 = vmul.f32 %v1593_v20, %v1412_v22 }
 0x92a   :  { %v1524_v25 = vsel %vm1523_vm13, %v2371_v11, %v1520_v21  ;;  %v1607_v30 = vpack.c.bf16 %v1601_v42, %v1599_v24 }
 0x92b   :  { %v1529_v27 = vsel %vm1526_vm14, %v1528_v23, %v1524_v25 }
 0x92c   :  { %v1594_v58 = vmul.f32 %v1529_v27, %v2885_v19  ;;  %1747 = vmatmul.bf16.vlgmr.msrb.gmra.mxu1 %v1607_v30 }
 0x92e   :  { %v1602_v36 = vmul.f32 %v1594_v58, %v1431_v33 }
 0x930   :  { %v1608_v12 = vpack.c.bf16 %v1602_v36, %v1600_v56 }
 0x932   :  { %1766 = vmatmul.bf16.vlgmr.msrb.gmra.mxu2 %v1608_v12 }
 0x939   :  { %v2910_v40 = vpop.f32.mrf.mxu1 }
 0x93a   :  { %v2082_v28 = vmul.f32 -1.442695, %v2910_v40  ;;  %v1434_v63 = vpop.f32.mrf.mxu0 }
 0x93c   :  { %2372 = vpow2.f32 %v2082_v28 }
 0x93f   :  { %v2913_v37 = vpop.f32.mrf.mxu2 }
 0x940   :  { %v2083_v35 = vmul.f32 -1.442695, %v2913_v37  ;;  %v1415_v3 = vpop.f32.mrf.mxu3 }
 0x941   :  { %v2916_v39 = vpop.f32.mrf.mxu1 }
 0x942   :  { %v2373_v41 = vpop.eup %2372  ;;  %2374 = vpow2.f32 %v2083_v35  ;;  %v2084_v19 = vmul.f32 -1.442695, %v2916_v39 }
 0x943   :  { %v1467_v32 = vadd.f32 1.0, %v2373_v41 }
 0x944   :  { %2376 = vpow2.f32 %v2084_v19 }
 0x945   :  { %2378 = vrcp.f32 %v1467_v32  ;;  %v1542_v0 = vand.u32 2147483648, %v1467_v32  ;;  %vm1536_vm0 = vweird.f32 %v1467_v32  ;;  %v1540_v55 = vand.u32 2147483647, %v1467_v32 }
 0x947   :  { %v2919_v29 = vpop.f32.mrf.mxu2  ;;  %v1543_v4 = vor.u32 1.1754944e-38, %v1542_v0  ;;  %vm1541_vm3 = vcmp.eq.f32.partialorder %v1540_v55, 8.507059e+37 }
 0x948   :  { %v2375_v1 = vpop.eup %2374  ;;  %v2085_v43 = vmul.f32 -1.442695, %v2919_v29  ;;  %v1417_v28 = vpop.f32.mrf.mxu3 }
 0x949   :  { %v1468_v44 = vadd.f32 1.0, %v2375_v1 }
 0x94a   :  { %v2377_v38 = vpop.eup %2376  ;;  %2380 = vpow2.f32 %v2085_v43 }
 0x94b   :  { %v2379_v34 = vpop.eup %2378  ;;  %2382 = vrcp.f32 %v1468_v44  ;;  %v1469_v46 = vadd.f32 1.0, %v2377_v38  ;;  %v1555_v61 = vand.u32 2147483647, %v1468_v44  ;;  %v1557_v7 = vand.u32 2147483648, %v1468_v44  ;;  %v1436_v38 = vpop.f32.mrf.mxu0 }
 0x94c   :  { %v1532_v45 = vmul.f32 %v2379_v34, %v1467_v32  ;;  %vm1537_vm15 = vweird.f32 %v2379_v34  ;;  %vm1551_vm5 = vweird.f32 %v1468_v44 }
 0x94d   :  { %2384 = vrcp.f32 %v1469_v46  ;;  %vm2922_vm1 = vmor %vm1536_vm0, %vm1537_vm15  ;;  %v1572_v13 = vand.u32 2147483648, %v1469_v46  ;;  %v1570_v16 = vand.u32 2147483647, %v1469_v46  ;;  %vm2932_vm7 = vcmp.eq.f32.partialorder %v1555_v61, 8.507059e+37 }
 0x94e   :  { %v1533_v31 = vsub.f32 1.0, %v1532_v45  ;;  %vm1566_vm8 = vweird.f32 %v1469_v46  ;;  %v1558_v24 = vor.u32 1.1754944e-38, %v1557_v7 }
 0x94f   :  { %v1573_v23 = vor.u32 1.1754944e-38, %v1572_v13  ;;  %vm1571_vm10 = vcmp.eq.f32.partialorder %v1570_v16, 8.507059e+37 }
 0x950   :  { %v2381_v47 = vpop.eup %2380  ;;  %v1534_v48 = vmul.f32 %v2379_v34, %v1533_v31 }
 0x951   :  { %v2383_v18 = vpop.eup %2382  ;;  %v1470_v49 = vadd.f32 1.0, %v2381_v47 }
 0x952   :  { %v1547_v51 = vmul.f32 %v2383_v18, %v1468_v44  ;;  %v1535_v52 = vadd.f32 %v2379_v34, %v1534_v48  ;;  %vm1552_vm2 = vweird.f32 %v2383_v18 }
 0x953   :  { %2386 = vrcp.f32 %v1470_v49  ;;  %v2385_v54 = vpop.eup %2384  ;;  %vm2928_vm6 = vmor %vm1551_vm5, %vm1552_vm2  ;;  %v1587_v27 = vand.u32 2147483648, %v1470_v49  ;;  %v1585_v33 = vand.u32 2147483647, %v1470_v49  ;;  %vm1581_vm12 = vweird.f32 %v1470_v49 }
 0x954   :  { %v1548_v11 = vsub.f32 1.0, %v1547_v51  ;;  %v1562_v2 = vmul.f32 %v2385_v54, %v1469_v46  ;;  %v1539_v62 = vsel %vm2922_vm1, %v2379_v34, %v1535_v52  ;;  %vm1567_vm4 = vweird.f32 %v2385_v54 }
 0x955   :  { %v1544_v9 = vsel %vm1541_vm3, %v1543_v4, %v1539_v62  ;;  %vm1568_vm9 = vmor %vm1566_vm8, %vm1567_vm4  ;;  %v1588_v41 = vor.u32 1.1754944e-38, %v1587_v27  ;;  %vm1586_vm14 = vcmp.eq.f32.partialorder %v1585_v33, 8.507059e+37 }
 0x956   :  { %v1549_v57 = vmul.f32 %v2383_v18, %v1548_v11  ;;  %v1563_v6 = vsub.f32 1.0, %v1562_v2  ;;  %v1595_v15 = vmul.f32 %v1544_v9, %v2910_v40 }
 0x958   :  { %v1550_v53 = vadd.f32 %v2383_v18, %v1549_v57  ;;  %v1564_v10 = vmul.f32 %v2385_v54, %v1563_v6  ;;  %v1603_v35 = vmul.f32 %v1595_v15, %v1415_v3 }
 0x959   :  { %v2387_v14 = vpop.eup %2386 }
 0x95a   :  { %v1577_v17 = vmul.f32 %v2387_v14, %v1470_v49  ;;  %v1565_v21 = vadd.f32 %v2385_v54, %v1564_v10  ;;  %v1554_v22 = vsel %vm2928_vm6, %v2383_v18, %v1550_v53  ;;  %vm1582_vm11 = vweird.f32 %v2387_v14 }
 0x95b   :  { %v1559_v56 = vsel %vm2932_vm7, %v1558_v24, %v1554_v22  ;;  %vm1583_vm13 = vmor %vm1581_vm12, %vm1582_vm11 }
 0x95c   :  { %v1578_v42 = vsub.f32 1.0, %v1577_v17  ;;  %v1569_v25 = vsel %vm1568_vm9, %v2385_v54, %v1565_v21  ;;  %v1596_v40 = vmul.f32 %v1559_v56, %v2913_v37 }
 0x95d   :  { %v1574_v30 = vsel %vm1571_vm10, %v1573_v23, %v1569_v25 }
 0x95e   :  { %v1579_v58 = vmul.f32 %v2387_v14, %v1578_v42  ;;  %v1597_v36 = vmul.f32 %v1574_v30, %v2916_v39  ;;  %v1604_v34 = vmul.f32 %v1596_v40, %v1434_v63 }
 0x960   :  { %v1580_v12 = vadd.f32 %v2387_v14, %v1579_v58  ;;  %v1605_v19 = vmul.f32 %v1597_v36, %v1417_v28 }
 0x962   :  { %v1584_v32 = vsel %vm1583_vm13, %v2387_v14, %v1580_v12  ;;  %v1609_v43 = vpack.c.bf16 %v1605_v19, %v1603_v35 }
 0x963   :  { %v1589_v1 = vsel %vm1586_vm14, %v1588_v41, %v1584_v32 }
 0x964   :  { %v1598_v44 = vmul.f32 %v1589_v1, %v2919_v29  ;;  %1752 = vmatmul.bf16.gmra.mxu1 %v1609_v43 }
 0x966   :  { %v1606_v45 = vmul.f32 %v1598_v44, %v1436_v38 }
 0x968   :  { %v1610_v39 = vpack.c.bf16 %v1606_v45, %v1604_v34 }
 0x96a   :  { %1771 = vmatmul.bf16.gmra.mxu2 %v1610_v39 }
 0x9a9   :  { %v1748_v46 = vpop.f32.mrf.mxu1 }
 0x9b1   :  { %v1750_v18 = vpop.f32.mrf.mxu1 }
 0x9b5   :  { %v1767_v31 = vpop.f32.mrf.mxu2 }
 0x9b6   :  { %v1768_v47 = vadd.f32 %v1767_v31, %v1748_v46 }
 0x9b8   :  { %v1777_v48 = vadd.f32 %v1768_v47, %v2850_v8 }
 0x9ba   :  { %1781 = vst [vmem:[#allocation10] sm:$0xff] %v1777_v48 }
 0x9bd   :  { %v1769_v37 = vpop.f32.mrf.mxu2 }
 0x9be   :  { %v1770_v49 = vadd.f32 %v1769_v37, %v1750_v18 }
 0x9c0   :  { %v1778_v51 = vadd.f32 %v1770_v49, %v2854_v26 }
 0x9c2   :  { %1782 = vst [vmem:[#allocation10 + $0x8] sm:$0xff] %v1778_v51 }
 0x9e1   :  { %v1753_v52 = vpop.f32.mrf.mxu1 }
 0x9e9   :  { %v1755_v11 = vpop.f32.mrf.mxu1 }
 0x9ed   :  { %v1772_v29 = vpop.f32.mrf.mxu2 }
 0x9ee   :  { %v1773_v0 = vadd.f32 %v1772_v29, %v1753_v52 }
 0x9f0   :  { %v1779_v54 = vadd.f32 %v1773_v0, %v2859_v59 }
 0x9f2   :  { %1783 = vst [vmem:[#allocation10 + $0x10] sm:$0xff] %v1779_v54 }
 0x9f5   :  { %v1774_v55 = vpop.f32.mrf.mxu2 }
 0x9f6   :  { %v1775_v8 = vadd.f32 %v1774_v55, %v1755_v11 }
 0x9f8   :  { %v1780_v2 = vadd.f32 %v1775_v8, %v2864_v5 }
 0x9fa   :  { %1784 = vst [vmem:[#allocation10 + $0x18] sm:$0xff] %v1780_v2 }
 0x9fb   :  { %1797 = dma.vmem_to_hbm [thread:$0]  %s1790_s13, 512, %s1792_s16, [#allocation4], %s2521_s25, %s2521_s25, %s2522_s26  }
 0x9fc   :  { %2517 = dma.done.wait [#allocation4], 512  }
 0x9fd   :  { %2518 = vsyncadd [#allocation4], 4294966784 }
 0x9fe   :  { %1802 = vsyncpa [#allocation3], 1 }
 0x9ff   :  { %1803 = vsyncpa [#allocation6], 1 }
 0xa00   :  { %1804 = vsyncpa [#allocation9], 1 }
 0xa01   :  { %1805 = vsyncpa [#allocation4], 1 }

</bundles_post_ra>
